<compile_context>
chip_gen: v5e
topology: v5e:2x2
jax: 0.10.0
libtpu: 0.0.40
codegen_flags: <defaults>
</compile_context>

<pallas_src>
import jax
import jax.numpy as jnp
from jax.experimental import pallas as pl
from jax.experimental.pallas import tpu as pltpu

_POOL = 10
_FEATS = 400
_K = _POOL * _FEATS  # 4000 flattened input features per row


def decinet_kernel(x_ref, w_ref, b_ref, o_ref):
    # x_ref: (TB, 4000)  flattened NCHW input tile
    # w_ref: (4000, 2)   folded (pool + linear1 + linear2) weight
    # b_ref: (1, 2)      folded bias
    # o_ref: (TB, 2)     softmax probabilities
    x = x_ref[...]

    # single MXU contraction absorbs pool + both linears
    z = jnp.dot(x, w_ref[...], preferred_element_type=jnp.float32) + b_ref[...]

    # ReLU
    z = jnp.maximum(z, 0.0)

    # softmax over the 2 classes (torch dim=1).  Exact divide: kernel is
    # HBM-read-bound, the VPU/EUP have enormous slack, so exactness is free.
    z_max = jnp.max(z, axis=-1, keepdims=True)
    e = jnp.exp(z - z_max)
    s = jnp.sum(e, axis=-1, keepdims=True)
    o_ref[...] = e / s


def fold_params(w1, b1, w2, b2):
    """One-time fold of avg-pool + linear1 + linear2 into (4000,2) weight + (1,2) bias.

    Hoisted out of the forward path so per-call work is just the Pallas launch.
    """
    w1_exp = jnp.repeat(jnp.transpose(w1), _POOL, axis=0) / float(_POOL)  # (4000, 20)
    w_fold = jnp.dot(w1_exp, jnp.transpose(w2))                           # (4000, 2)
    b_fold = (jnp.dot(b1, jnp.transpose(w2)) + b2).reshape(1, 2)          # (1, 2)
    return w_fold, b_fold


def _round_up(n, m):
    return ((n + m - 1) // m) * m


def _default_tb():
    # v5e: TB=512 (8 MiB tile) already puts per-step overhead <4%; bigger buys
    # nothing.  v6e / v7x: TB=1024 halves the fixed per-grid-step cost.
    try:
        kind = jax.devices()[0].device_kind.lower()
    except Exception:
        return 512
    if "v5" in kind:
        return 512
    return 1024


def _pick_tb(B, tb):
    """Batch tile size.  Megacore-aware: give the 'parallel' batch axis at
    least 2 grid programs for mid-size batches so both v7x TensorCores stream
    HBM (no effect on 1-TC chips)."""
    if B > tb:
        return tb
    if B > 64:
        return min(_round_up(pl.cdiv(B, 2), 8), tb)
    return B


def decinet_forward_folded(x, w_fold, b_fold, *, tb=None):
    """x: (B, C, H, W) float32 with C*H*(W//10) == 400 (so C*H*W == 4000)."""
    B, C, H, W = x.shape
    assert W % _POOL == 0 and C * H * (W // _POOL) == _FEATS, (
        "flattened pooled features must be 400")
    K = C * H * W  # 4000

    # Glue: lane-dense 2-D slab; pooling window is contiguous along the
    # flattened axis (index = f*10 + p), so no window axis is carried in.
    x_flat = x.reshape(B, K)

    tb = _default_tb() if tb is None else tb
    TB = _pick_tb(B, tb)
    grid = (pl.cdiv(B, TB),)

    # x tile: TB*K*4 bytes, double-buffered; weight ~2 MiB lane-padded,
    # single-buffered.  48 MiB for the 1024-row path (fits v7x's 64 MiB VMEM
    # with headroom), 32 MiB otherwise (legal on v5e whose scoped default is
    # only 16 MiB).
    vmem_limit = (48 if TB > 512 else 32) * 1024 * 1024

    return pl.pallas_call(
        decinet_kernel,
        out_shape=jax.ShapeDtypeStruct((B, 2), jnp.float32),
        grid=grid,
        in_specs=[
            # streamed per batch tile (double-buffered by default)
            pl.BlockSpec((TB, K), lambda i: (i, 0)),
            # resident operands: constant index_map -> single buffer
            pl.BlockSpec((K, 2), lambda i: (0, 0), pipeline_mode=pl.Buffered(1)),
            pl.BlockSpec((1, 2), lambda i: (0, 0), pipeline_mode=pl.Buffered(1)),
        ],
        out_specs=pl.BlockSpec((TB, 2), lambda i: (i, 0)),
        compiler_params=pltpu.CompilerParams(
            dimension_semantics=("parallel",),
            vmem_limit_bytes=vmem_limit,
        ),
    )(x_flat, w_fold, b_fold)


def decinet_forward(x, w1, b1, w2, b2, *, tb=None):
    """Convenience wrapper taking raw linear1/linear2 parameters."""
    w_fold, b_fold = fold_params(w1, b1, w2, b2)
    return decinet_forward_folded(x, w_fold, b_fold, tb=tb)


def _init_params(key):
    """Deterministic parameter init (matches nn.Linear default U(-1/sqrt(fan_in), .))."""
    k1, k2, k3, k4 = jax.random.split(key, 4)
    bound1 = 1.0 / jnp.sqrt(400.0)
    bound2 = 1.0 / jnp.sqrt(20.0)
    w1 = jax.random.uniform(k1, (20, 400), jnp.float32, -bound1, bound1)
    b1 = jax.random.uniform(k2, (20,), jnp.float32, -bound1, bound1)
    w2 = jax.random.uniform(k3, (2, 20), jnp.float32, -bound2, bound2)
    b2 = jax.random.uniform(k4, (2,), jnp.float32, -bound2, bound2)
    return w1, b1, w2, b2


def _ref_forward(x, w1, b1, w2, b2):
    """Pure-JAX reference of the PyTorch forward, for a sanity check."""
    B, C, H, W = x.shape
    pooled = x.reshape(B, C, H, W // _POOL, _POOL).mean(axis=-1)  # avg_pool2d (1, 10)
    flat = pooled.reshape(B, -1)                                  # (B, 400)
    h = flat @ w1.T + b1
    z = h @ w2.T + b2
    z = jnp.maximum(z, 0.0)
    return jax.nn.softmax(z, axis=1)


if __name__ == "__main__":
    key = jax.random.PRNGKey(0)
    kx, kp = jax.random.split(key)

    # Small shapes consistent with the module: C*H*(W//10) must equal 400.
    B, C, H, W = 2, 4, 10, 100
    x = jax.random.normal(kx, (B, C, H, W), jnp.float32)

    w1, b1, w2, b2 = _init_params(kp)

    # Fold once (precompute), then launch the kernel.
    w_fold, b_fold = fold_params(w1, b1, w2, b2)
    out = decinet_forward_folded(x, w_fold, b_fold)
    out = jax.block_until_ready(out)

    ref = _ref_forward(x, w1, b1, w2, b2)
    assert out.shape == (B, 2)
    # exact softmax divide; remaining tolerance only covers the folded-weight
    # accumulation-order difference (single 4000-length f32 sum vs two stages)
    assert jnp.allclose(out, ref, atol=1e-4, rtol=1e-4), (
        f"max abs diff {jnp.max(jnp.abs(out - ref))}")

    print("KERNEL_OK")
</pallas_src>

<mosaic_0001>
module attributes {stable_mosaic.version = 11 : i64} {
  func.func @decinet_kernel(%arg0: i32, %arg1: memref<2x4000xf32, #tpu.memory_space<vmem>>, %arg2: memref<4000x2xf32, #tpu.memory_space<vmem>>, %arg3: memref<1x2xf32, #tpu.memory_space<vmem>>, %arg4: memref<2x2xf32, #tpu.memory_space<vmem>>) attributes {dimension_semantics = [#tpu.dimension_semantics<parallel>], iteration_bounds = array<i64: 1>, scalar_prefetch = 0 : i64, scratch_operands = 0 : i64, tpu.core_type = #tpu.core_type<tc>, window_params = [{transform_indices = @transform_0, window_bounds = array<i64: 2, 4000>}, {pipeline_mode = #tpu.pipeline_mode<synchronous>, transform_indices = @transform_1, window_bounds = array<i64: 4000, 2>}, {pipeline_mode = #tpu.pipeline_mode<synchronous>, transform_indices = @transform_2, window_bounds = array<i64: 1, 2>}, {transform_indices = @transform_3, window_bounds = array<i64: 2, 2>}]} {
    %c0 = arith.constant 0 : index
    %c0_0 = arith.constant 0 : index
    %0 = vector.load %arg1[%c0, %c0_0] : memref<2x4000xf32, #tpu.memory_space<vmem>>, vector<2x4000xf32>
    %c0_1 = arith.constant 0 : index
    %c0_2 = arith.constant 0 : index
    %1 = vector.load %arg2[%c0_1, %c0_2] : memref<4000x2xf32, #tpu.memory_space<vmem>>, vector<4000x2xf32>
    %cst = arith.constant dense<0.000000e+00> : vector<2x2xf32>
    %2 = tpu.matmul %0, %1, %cst {dimension_numbers = #tpu.dot_dimension_numbers<[1], [0], [0], [1], [0, 0, 1, 1], [], []>} : vector<2x4000xf32>, vector<4000x2xf32>, vector<2x2xf32> -> vector<2x2xf32>
    %c0_3 = arith.constant 0 : index
    %c0_4 = arith.constant 0 : index
    %3 = vector.load %arg3[%c0_3, %c0_4] : memref<1x2xf32, #tpu.memory_space<vmem>>, vector<1x2xf32>
    %4 = vector.broadcast %3 : vector<1x2xf32> to vector<2x2xf32>
    %5 = arith.addf %2, %4 : vector<2x2xf32>
    %cst_5 = arith.constant 0.000000e+00 : f32
    %6 = vector.broadcast %cst_5 : f32 to vector<2x2xf32>
    %7 = arith.maximumf %5, %6 : vector<2x2xf32>
    %cst_6 = arith.constant dense<0xFF800000> : vector<2xf32>
    %8 = vector.multi_reduction <maximumf>, %7, %cst_6 [1] : vector<2x2xf32> to vector<2xf32>
    %9 = vector.shape_cast %8 : vector<2xf32> to vector<2x1xf32>
    %10 = vector.broadcast %9 : vector<2x1xf32> to vector<2x2xf32>
    %11 = arith.subf %7, %10 : vector<2x2xf32>
    %12 = math.exp %11 : vector<2x2xf32>
    %cst_7 = arith.constant dense<0.000000e+00> : vector<2xf32>
    %13 = vector.multi_reduction <add>, %12, %cst_7 [1] : vector<2x2xf32> to vector<2xf32>
    %14 = vector.shape_cast %13 : vector<2xf32> to vector<2x1xf32>
    %15 = vector.broadcast %14 : vector<2x1xf32> to vector<2x2xf32>
    %16 = arith.divf %12, %15 : vector<2x2xf32>
    %c0_8 = arith.constant 0 : index
    %c0_9 = arith.constant 0 : index
    %17 = vector.load %arg4[%c0_8, %c0_9] : memref<2x2xf32, #tpu.memory_space<vmem>>, vector<2x2xf32>
    tpu.vector_store %arg4[%c0_8, %c0_9], %16 {strides = array<i32>} : memref<2x2xf32, #tpu.memory_space<vmem>>, vector<2x2xf32>,
    return
  }
  func.func @transform_0(%arg0: i32) -> (i32, i32) {
    %c0_i32 = arith.constant 0 : i32
    %c0_i32_0 = arith.constant 0 : i32
    return %arg0, %c0_i32 : i32, i32
  }
  func.func @transform_1(%arg0: i32) -> (i32, i32) {
    %c0_i32 = arith.constant 0 : i32
    %c0_i32_0 = arith.constant 0 : i32
    %c0_i32_1 = arith.constant 0 : i32
    return %c0_i32, %c0_i32_0 : i32, i32
  }
  func.func @transform_2(%arg0: i32) -> (i32, i32) {
    %c0_i32 = arith.constant 0 : i32
    %c0_i32_0 = arith.constant 0 : i32
    %c0_i32_1 = arith.constant 0 : i32
    return %c0_i32, %c0_i32_0 : i32, i32
  }
  func.func @transform_3(%arg0: i32) -> (i32, i32) {
    %c0_i32 = arith.constant 0 : i32
    %c0_i32_0 = arith.constant 0 : i32
    return %arg0, %c0_i32 : i32, i32
  }
}

</mosaic_0001>

<bundles_post_ra>
// kernel: tpu_custom_call.1
= control target key start
LH: loop header
LB: loop body
LE: loop exit
PB: predicated region body
PF: predicated region fallthrough
CT: control target
= control target key end

     0   :  { %s2922_s0 = inlined_call_operand.vmem [shape: f32[2,4000], index: 0, kind: input, shape index: {}]   ;;  %s2923_s1 = inlined_call_operand.vmem [shape: f32[4000,2], index: 1, kind: input, shape index: {}]   ;;  %s2924_s2 = inlined_call_operand.vmem [shape: f32[1,2], index: 2, kind: input, shape index: {}]   ;;  %s2925_s3 = inlined_call_operand.hbm [shape: f32[2,2], index: 3, kind: output, shape index: {}]  }
   0x1   :  { %v38_v0 = vld [vmem:[%s2923_s1 + $0x78] sm:$0xff]  ;;  %v37_v2 = vld [vmem:[%s2923_s1 + $0x70] sm:$0xff]  ;;  %v36_v6 = vld [vmem:[%s2923_s1 + $0x68] sm:$0xff] }
   0x2   :  { %v70_v1 = vld [vmem:[%s2923_s1 + $0x178] sm:$0xff]  ;;  %610 = vmatpush.msra.mxu0 %v38_v0  ;;  %v69_v4 = vld [vmem:[%s2923_s1 + $0x170] sm:$0xff]  ;;  %v68_v8 = vld [vmem:[%s2923_s1 + $0x168] sm:$0xff] }
   0x3   :  { %650 = vmatpush.msra.mxu2 %v70_v1  ;;  %v54_v3 = vld [vmem:[%s2923_s1 + $0xf8] sm:$0xff]  ;;  %v53_v7 = vld [vmem:[%s2923_s1 + $0xf0] sm:$0xff]  ;;  %v52_v10 = vld [vmem:[%s2923_s1 + $0xe8] sm:$0xff] }
   0x4   :  { %v86_v5 = vld [vmem:[%s2923_s1 + $0x1f8] sm:$0xff]  ;;  %630 = vmatpush.msra.mxu1 %v54_v3  ;;  %611 = vmatpush.msra.mxu0 %v37_v2  ;;  %v85_v9 = vld [vmem:[%s2923_s1 + $0x1f0] sm:$0xff]  ;;  %v35_v11 = vld [vmem:[%s2923_s1 + $0x60] sm:$0xff] }
   0x5   :  { %670 = vmatpush.msra.mxu3 %v86_v5  ;;  %651 = vmatpush.msra.mxu2 %v69_v4  ;;  %v67_v12 = vld [vmem:[%s2923_s1 + $0x160] sm:$0xff]  ;;  %v84_v13 = vld [vmem:[%s2923_s1 + $0x1e8] sm:$0xff]  ;;  %v34_v16 = vld [vmem:[%s2923_s1 + $0x58] sm:$0xff] }
   0x6   :  { %631 = vmatpush.msra.mxu1 %v53_v7  ;;  %612 = vmatpush.msra.mxu0 %v36_v6  ;;  %v51_v14 = vld [vmem:[%s2923_s1 + $0xe0] sm:$0xff]  ;;  %v66_v17 = vld [vmem:[%s2923_s1 + $0x158] sm:$0xff]  ;;  %v33_v20 = vld [vmem:[%s2923_s1 + $0x50] sm:$0xff] }
   0x7   :  { %671 = vmatpush.msra.mxu3 %v85_v9  ;;  %652 = vmatpush.msra.mxu2 %v68_v8  ;;  %v83_v15 = vld [vmem:[%s2923_s1 + $0x1e0] sm:$0xff]  ;;  %v50_v18 = vld [vmem:[%s2923_s1 + $0xd8] sm:$0xff]  ;;  %v65_v21 = vld [vmem:[%s2923_s1 + $0x150] sm:$0xff] }
   0x8   :  { %632 = vmatpush.msra.mxu1 %v52_v10  ;;  %613 = vmatpush.msra.mxu0 %v35_v11  ;;  %v82_v19 = vld [vmem:[%s2923_s1 + $0x1d8] sm:$0xff]  ;;  %v49_v22 = vld [vmem:[%s2923_s1 + $0xd0] sm:$0xff]  ;;  %v32_v24 = vld [vmem:[%s2923_s1 + $0x48] sm:$0xff] }
   0x9   :  { %672 = vmatpush.msra.mxu3 %v84_v13  ;;  %653 = vmatpush.msra.mxu2 %v67_v12  ;;  %v81_v23 = vld [vmem:[%s2923_s1 + $0x1d0] sm:$0xff]  ;;  %v64_v25 = vld [vmem:[%s2923_s1 + $0x148] sm:$0xff]  ;;  %v31_v28 = vld [vmem:[%s2923_s1 + $0x40] sm:$0xff] }
   0xa   :  { %633 = vmatpush.msra.mxu1 %v51_v14  ;;  %614 = vmatpush.msra.mxu0 %v34_v16  ;;  %v48_v26 = vld [vmem:[%s2923_s1 + $0xc8] sm:$0xff]  ;;  %v63_v29 = vld [vmem:[%s2923_s1 + $0x140] sm:$0xff]  ;;  %v30_v32 = vld [vmem:[%s2923_s1 + $0x38] sm:$0xff] }
   0xb   :  { %673 = vmatpush.msra.mxu3 %v83_v15  ;;  %654 = vmatpush.msra.mxu2 %v66_v17  ;;  %v80_v27 = vld [vmem:[%s2923_s1 + $0x1c8] sm:$0xff]  ;;  %v47_v30 = vld [vmem:[%s2923_s1 + $0xc0] sm:$0xff]  ;;  %v62_v33 = vld [vmem:[%s2923_s1 + $0x138] sm:$0xff] }
   0xc   :  { %634 = vmatpush.msra.mxu1 %v50_v18  ;;  %615 = vmatpush.msra.mxu0 %v33_v20  ;;  %v79_v31 = vld [vmem:[%s2923_s1 + $0x1c0] sm:$0xff]  ;;  %v46_v34 = vld [vmem:[%s2923_s1 + $0xb8] sm:$0xff]  ;;  %v29_v36 = vld [vmem:[%s2923_s1 + $0x30] sm:$0xff] }
   0xd   :  { %674 = vmatpush.msra.mxu3 %v82_v19  ;;  %655 = vmatpush.msra.mxu2 %v65_v21  ;;  %v78_v35 = vld [vmem:[%s2923_s1 + $0x1b8] sm:$0xff]  ;;  %v61_v37 = vld [vmem:[%s2923_s1 + $0x130] sm:$0xff]  ;;  %v28_v40 = vld [vmem:[%s2923_s1 + $0x28] sm:$0xff] }
   0xe   :  { %635 = vmatpush.msra.mxu1 %v49_v22  ;;  %616 = vmatpush.msra.mxu0 %v32_v24  ;;  %v45_v38 = vld [vmem:[%s2923_s1 + $0xb0] sm:$0xff]  ;;  %v60_v41 = vld [vmem:[%s2923_s1 + $0x128] sm:$0xff]  ;;  %v27_v44 = vld [vmem:[%s2923_s1 + $0x20] sm:$0xff] }
   0xf   :  { %675 = vmatpush.msra.mxu3 %v81_v23  ;;  %656 = vmatpush.msra.mxu2 %v64_v25  ;;  %v77_v39 = vld [vmem:[%s2923_s1 + $0x1b0] sm:$0xff]  ;;  %v44_v42 = vld [vmem:[%s2923_s1 + $0xa8] sm:$0xff]  ;;  %v59_v45 = vld [vmem:[%s2923_s1 + $0x120] sm:$0xff] }
  0x10   :  { %636 = vmatpush.msra.mxu1 %v48_v26  ;;  %617 = vmatpush.msra.mxu0 %v31_v28  ;;  %v76_v43 = vld [vmem:[%s2923_s1 + $0x1a8] sm:$0xff]  ;;  %v43_v46 = vld [vmem:[%s2923_s1 + $0xa0] sm:$0xff]  ;;  %v26_v48 = vld [vmem:[%s2923_s1 + $0x18] sm:$0xff] }
  0x11   :  { %676 = vmatpush.msra.mxu3 %v80_v27  ;;  %657 = vmatpush.msra.mxu2 %v63_v29  ;;  %v75_v47 = vld [vmem:[%s2923_s1 + $0x1a0] sm:$0xff]  ;;  %v58_v49 = vld [vmem:[%s2923_s1 + $0x118] sm:$0xff]  ;;  %v25_v52 = vld [vmem:[%s2923_s1 + $0x10] sm:$0xff] }
  0x12   :  { %637 = vmatpush.msra.mxu1 %v47_v30  ;;  %618 = vmatpush.msra.mxu0 %v30_v32  ;;  %v42_v50 = vld [vmem:[%s2923_s1 + $0x98] sm:$0xff]  ;;  %v57_v53 = vld [vmem:[%s2923_s1 + $0x110] sm:$0xff]  ;;  %v24_v56 = vld [vmem:[%s2923_s1 + $0x8] sm:$0xff] }
  0x13   :  { %677 = vmatpush.msra.mxu3 %v79_v31  ;;  %658 = vmatpush.msra.mxu2 %v62_v33  ;;  %v74_v51 = vld [vmem:[%s2923_s1 + $0x198] sm:$0xff]  ;;  %v41_v54 = vld [vmem:[%s2923_s1 + $0x90] sm:$0xff]  ;;  %v56_v57 = vld [vmem:[%s2923_s1 + $0x108] sm:$0xff] }
  0x14   :  { %638 = vmatpush.msra.mxu1 %v46_v34  ;;  %619 = vmatpush.msra.mxu0 %v29_v36  ;;  %v73_v55 = vld [vmem:[%s2923_s1 + $0x190] sm:$0xff]  ;;  %v40_v58 = vld [vmem:[%s2923_s1 + $0x88] sm:$0xff]  ;;  %v23_v60 = vld [vmem:[%s2923_s1] sm:$0xff] }
  0x15   :  { %678 = vmatpush.msra.mxu3 %v78_v35  ;;  %659 = vmatpush.msra.mxu2 %v61_v37  ;;  %v72_v59 = vld [vmem:[%s2923_s1 + $0x188] sm:$0xff]  ;;  %v55_v61 = vld [vmem:[%s2923_s1 + $0x100] sm:$0xff]  ;;  %v102_v62 = vld [vmem:[%s2923_s1 + $0x278] sm:$0xff] }
  0x16   :  { %639 = vmatpush.msra.mxu1 %v45_v38  ;;  %620 = vmatpush.msra.mxu0 %v28_v40  ;;  %v134_v63 = vld [vmem:[%s2923_s1 + $0x378] sm:$0xff]  ;;  %v39_v0 = vld [vmem:[%s2923_s1 + $0x80] sm:$0xff]  ;;  %v101_v2 = vld [vmem:[%s2923_s1 + $0x270] sm:$0xff] }
  0x17   :  { %679 = vmatpush.msra.mxu3 %v77_v39  ;;  %660 = vmatpush.msra.mxu2 %v60_v41  ;;  %v71_v1 = vld [vmem:[%s2923_s1 + $0x180] sm:$0xff]  ;;  %v118_v3 = vld [vmem:[%s2923_s1 + $0x2f8] sm:$0xff]  ;;  %v133_v4 = vld [vmem:[%s2923_s1 + $0x370] sm:$0xff] }
  0x18   :  { %640 = vmatpush.msra.mxu1 %v44_v42  ;;  %621 = vmatpush.msra.mxu0 %v27_v44  ;;  %v150_v5 = vld [vmem:[%s2923_s1 + $0x3f8] sm:$0xff]  ;;  %v100_v6 = vld [vmem:[%s2923_s1 + $0x268] sm:$0xff]  ;;  %v117_v7 = vld [vmem:[%s2923_s1 + $0x2f0] sm:$0xff] }
  0x19   :  { %680 = vmatpush.msra.mxu3 %v76_v43  ;;  %661 = vmatpush.msra.mxu2 %v59_v45  ;;  %v132_v8 = vld [vmem:[%s2923_s1 + $0x368] sm:$0xff]  ;;  %v149_v9 = vld [vmem:[%s2923_s1 + $0x3f0] sm:$0xff]  ;;  %v99_v10 = vld [vmem:[%s2923_s1 + $0x260] sm:$0xff] }
  0x1a   :  { %641 = vmatpush.msra.mxu1 %v43_v46  ;;  %622 = vmatpush.msra.mxu0 %v26_v48  ;;  %v116_v11 = vld [vmem:[%s2923_s1 + $0x2e8] sm:$0xff]  ;;  %v131_v12 = vld [vmem:[%s2923_s1 + $0x360] sm:$0xff]  ;;  %v98_v14 = vld [vmem:[%s2923_s1 + $0x258] sm:$0xff] }
  0x1b   :  { %681 = vmatpush.msra.mxu3 %v75_v47  ;;  %662 = vmatpush.msra.mxu2 %v58_v49  ;;  %v148_v13 = vld [vmem:[%s2923_s1 + $0x3e8] sm:$0xff]  ;;  %v115_v15 = vld [vmem:[%s2923_s1 + $0x2e0] sm:$0xff]  ;;  %v130_v16 = vld [vmem:[%s2923_s1 + $0x358] sm:$0xff] }
  0x1c   :  { %642 = vmatpush.msra.mxu1 %v42_v50  ;;  %623 = vmatpush.msra.mxu0 %v25_v52  ;;  %v147_v17 = vld [vmem:[%s2923_s1 + $0x3e0] sm:$0xff]  ;;  %v97_v18 = vld [vmem:[%s2923_s1 + $0x250] sm:$0xff]  ;;  %v114_v19 = vld [vmem:[%s2923_s1 + $0x2d8] sm:$0xff] }
  0x1d   :  { %682 = vmatpush.msra.mxu3 %v74_v51  ;;  %663 = vmatpush.msra.mxu2 %v57_v53  ;;  %v129_v20 = vld [vmem:[%s2923_s1 + $0x350] sm:$0xff]  ;;  %v146_v21 = vld [vmem:[%s2923_s1 + $0x3d8] sm:$0xff]  ;;  %v96_v22 = vld [vmem:[%s2923_s1 + $0x248] sm:$0xff] }
  0x1e   :  { %643 = vmatpush.msra.mxu1 %v41_v54  ;;  %624 = vmatpush.msra.mxu0 %v24_v56  ;;  %v113_v23 = vld [vmem:[%s2923_s1 + $0x2d0] sm:$0xff]  ;;  %v128_v24 = vld [vmem:[%s2923_s1 + $0x348] sm:$0xff]  ;;  %v15_v26 = vld [vmem:[%s2922_s0] sm:$0xff] }
  0x1f   :  { %683 = vmatpush.msra.mxu3 %v73_v55  ;;  %664 = vmatpush.msra.mxu2 %v56_v57  ;;  %v145_v25 = vld [vmem:[%s2923_s1 + $0x3d0] sm:$0xff]  ;;  %v95_v27 = vld [vmem:[%s2923_s1 + $0x240] sm:$0xff]  ;;  %v112_v28 = vld [vmem:[%s2923_s1 + $0x2c8] sm:$0xff]  ;;  %535 = vst [vmem:[#allocation1] ss:$4 sm:$0xff] %v15_v26 }
  0x20   :  { %644 = vmatpush.msra.mxu1 %v40_v58  ;;  %625 = vmatpush.msra.mxu0 %v23_v60  ;;  %v127_v29 = vld [vmem:[%s2923_s1 + $0x340] sm:$0xff]  ;;  %v144_v30 = vld [vmem:[%s2923_s1 + $0x3c8] sm:$0xff]  ;;  %v94_v31 = vld [vmem:[%s2923_s1 + $0x238] sm:$0xff] }
  0x21   :  { %684 = vmatpush.msra.mxu3 %v72_v59  ;;  %665 = vmatpush.msra.mxu2 %v55_v61  ;;  %v111_v32 = vld [vmem:[%s2923_s1 + $0x2c0] sm:$0xff]  ;;  %v126_v33 = vld [vmem:[%s2923_s1 + $0x338] sm:$0xff]  ;;  %v93_v35 = vld [vmem:[%s2923_s1 + $0x230] sm:$0xff] }
  0x22   :  { %690 = vmatpush.msrb.mxu0 %v102_v62  ;;  %645 = vmatpush.msra.mxu1 %v39_v0  ;;  %v143_v34 = vld [vmem:[%s2923_s1 + $0x3c0] sm:$0xff]  ;;  %v110_v36 = vld [vmem:[%s2923_s1 + $0x2b8] sm:$0xff]  ;;  %v125_v37 = vld [vmem:[%s2923_s1 + $0x330] sm:$0xff] }
  0x23   :  { %730 = vmatpush.msrb.mxu2 %v134_v63  ;;  %685 = vmatpush.msra.mxu3 %v71_v1  ;;  %v142_v38 = vld [vmem:[%s2923_s1 + $0x3b8] sm:$0xff]  ;;  %v92_v39 = vld [vmem:[%s2923_s1 + $0x228] sm:$0xff]  ;;  %v109_v40 = vld [vmem:[%s2923_s1 + $0x2b0] sm:$0xff] }
  0x24   :  { %691 = vmatpush.msrb.mxu0 %v101_v2  ;;  %710 = vmatpush.msrb.mxu1 %v118_v3  ;;  %v124_v41 = vld [vmem:[%s2923_s1 + $0x328] sm:$0xff]  ;;  %v141_v42 = vld [vmem:[%s2923_s1 + $0x3b0] sm:$0xff]  ;;  %v91_v44 = vld [vmem:[%s2923_s1 + $0x220] sm:$0xff] }
  0x25   :  { %731 = vmatpush.msrb.mxu2 %v133_v4  ;;  %750 = vmatpush.msrb.mxu3 %v150_v5  ;;  %v16_v43 = vld [vmem:[%s2922_s0 + $0x8] sm:$0xff]  ;;  %v17_v46 = vld [vmem:[%s2922_s0 + $0x10] sm:$0xff]  ;;  %v123_v47 = vld [vmem:[%s2923_s1 + $0x320] sm:$0xff] }
  0x26   :  { %692 = vmatpush.msrb.mxu0 %v100_v6  ;;  %711 = vmatpush.msrb.mxu1 %v117_v7  ;;  %v108_v45 = vld [vmem:[%s2923_s1 + $0x2a8] sm:$0xff]  ;;  %537 = vst [vmem:[#allocation1 + $0x20] ss:$4 sm:$0xff] %v16_v43  ;;  %v538_v48 = vld.sshfl [vmem:[#allocation1] sm:$0xff pattern:$0x73625140] }
  0x27   :  { %732 = vmatpush.msrb.mxu2 %v132_v8  ;;  %751 = vmatpush.msrb.mxu3 %v149_v9  ;;  %v540_v49 = vld.sshfl [vmem:[#allocation1 + $0x10] sm:$0xff pattern:$0x73625140]  ;;  %v1683_v50 = vld.sshfl [vmem:[#allocation1 + $0x8] sm:$0xff pattern:$0x73625140] }
  0x28   :  { %693 = vmatpush.msrb.mxu0 %v99_v10  ;;  %712 = vmatpush.msrb.mxu1 %v116_v11  ;;  %v1685_v51 = vld.sshfl [vmem:[#allocation1 + $0x18] sm:$0xff pattern:$0x73625140]  ;;  %v140_v52 = vld [vmem:[%s2923_s1 + $0x3a8] sm:$0xff]  ;;  %v107_v54 = vld [vmem:[%s2923_s1 + $0x2a0] sm:$0xff] }
  0x29   :  { %733 = vmatpush.msrb.mxu2 %v131_v12  ;;  %752 = vmatpush.msrb.mxu3 %v148_v13  ;;  %v90_v53 = vld [vmem:[%s2923_s1 + $0x218] sm:$0xff]  ;;  %546 = vst [vmem:[#allocation1] ss:$4 sm:$0xff] %v17_v46  ;;  %v139_v56 = vld [vmem:[%s2923_s1 + $0x3a0] sm:$0xff]  ;;  %v89_v57 = vld [vmem:[%s2923_s1 + $0x210] sm:$0xff] }
  0x2a   :  { %694 = vmatpush.msrb.mxu0 %v98_v14  ;;  %713 = vmatpush.msrb.mxu1 %v115_v15  ;;  %v122_v55 = vld [vmem:[%s2923_s1 + $0x318] sm:$0xff]  ;;  %v121_v59 = vld [vmem:[%s2923_s1 + $0x310] sm:$0xff]  ;;  %v88_v61 = vld [vmem:[%s2923_s1 + $0x208] sm:$0xff] }
  0x2b   :  { %734 = vmatpush.msrb.mxu2 %v130_v16  ;;  %753 = vmatpush.msrb.mxu3 %v147_v17  ;;  %v106_v58 = vld [vmem:[%s2923_s1 + $0x298] sm:$0xff]  ;;  %v105_v62 = vld [vmem:[%s2923_s1 + $0x290] sm:$0xff]  ;;  %v120_v4 = vld [vmem:[%s2923_s1 + $0x308] sm:$0xff] }
  0x2c   :  { %695 = vmatpush.msrb.mxu0 %v97_v18  ;;  %714 = vmatpush.msrb.mxu1 %v114_v19  ;;  %v138_v60 = vld [vmem:[%s2923_s1 + $0x398] sm:$0xff]  ;;  %v137_v5 = vld [vmem:[%s2923_s1 + $0x390] sm:$0xff]  ;;  %v87_v6 = vld [vmem:[%s2923_s1 + $0x200] sm:$0xff] }
  0x2d   :  { %735 = vmatpush.msrb.mxu2 %v129_v20  ;;  %754 = vmatpush.msrb.mxu3 %v146_v21  ;;  %v18_v63 = vld [vmem:[%s2922_s0 + $0x18] sm:$0xff]  ;;  %v1723_v0 = vld.sshfl [vmem:[#allocation1 + $0x30] sm:$0xff pattern:$0x73625140]  ;;  %v104_v7 = vld [vmem:[%s2923_s1 + $0x288] sm:$0xff] }
  0x2e   :  { %696 = vmatpush.msrb.mxu0 %v96_v22  ;;  %715 = vmatpush.msrb.mxu1 %v113_v23  ;;  %v1725_v1 = vld.sshfl [vmem:[#allocation1 + $0x20] sm:$0xff pattern:$0x73625140]  ;;  %v1727_v2 = vld.sshfl [vmem:[#allocation1 + $0x38] sm:$0xff pattern:$0x73625140] }
  0x2f   :  { %736 = vmatpush.msrb.mxu2 %v128_v24  ;;  %755 = vmatpush.msrb.mxu3 %v145_v25  ;;  %v1729_v3 = vld.sshfl [vmem:[#allocation1 + $0x28] sm:$0xff pattern:$0x73625140]  ;;  %v119_v8 = vld [vmem:[%s2923_s1 + $0x300] sm:$0xff]  ;;  %v166_v10 = vld [vmem:[%s2923_s1 + $0x478] sm:$0xff] }
  0x30   :  { %697 = vmatpush.msrb.mxu0 %v95_v27  ;;  %716 = vmatpush.msrb.mxu1 %v112_v28  ;;  %547 = vst [vmem:[#allocation1 + $0x20] ss:$4 sm:$0xff] %v18_v63  ;;  %v136_v9 = vld [vmem:[%s2923_s1 + $0x388] sm:$0xff]  ;;  %v198_v11 = vld [vmem:[%s2923_s1 + $0x578] sm:$0xff]  ;;  %v103_v12 = vld [vmem:[%s2923_s1 + $0x280] sm:$0xff] }
  0x31   :  { %737 = vmatpush.msrb.mxu2 %v127_v29  ;;  %756 = vmatpush.msrb.mxu3 %v144_v30  ;;  %v135_v13 = vld [vmem:[%s2923_s1 + $0x380] sm:$0xff]  ;;  %v165_v14 = vld [vmem:[%s2923_s1 + $0x470] sm:$0xff]  ;;  %v182_v15 = vld [vmem:[%s2923_s1 + $0x4f8] sm:$0xff] }
  0x32   :  { %698 = vmatpush.msrb.mxu0 %v94_v31  ;;  %717 = vmatpush.msrb.mxu1 %v111_v32  ;;  %v197_v16 = vld [vmem:[%s2923_s1 + $0x570] sm:$0xff]  ;;  %v214_v17 = vld [vmem:[%s2923_s1 + $0x5f8] sm:$0xff]  ;;  %v164_v18 = vld [vmem:[%s2923_s1 + $0x468] sm:$0xff] }
  0x33   :  { %738 = vmatpush.msrb.mxu2 %v126_v33  ;;  %757 = vmatpush.msrb.mxu3 %v143_v34  ;;  %v181_v19 = vld [vmem:[%s2923_s1 + $0x4f0] sm:$0xff]  ;;  %v196_v20 = vld [vmem:[%s2923_s1 + $0x568] sm:$0xff]  ;;  %v163_v22 = vld [vmem:[%s2923_s1 + $0x460] sm:$0xff] }
  0x34   :  { %699 = vmatpush.msrb.mxu0 %v93_v35  ;;  %718 = vmatpush.msrb.mxu1 %v110_v36  ;;  %v213_v21 = vld [vmem:[%s2923_s1 + $0x5f0] sm:$0xff]  ;;  %v180_v23 = vld [vmem:[%s2923_s1 + $0x4e8] sm:$0xff]  ;;  %v195_v24 = vld [vmem:[%s2923_s1 + $0x560] sm:$0xff] }
  0x35   :  { %739 = vmatpush.msrb.mxu2 %v125_v37  ;;  %758 = vmatpush.msrb.mxu3 %v142_v38  ;;  %v212_v25 = vld [vmem:[%s2923_s1 + $0x5e8] sm:$0xff]  ;;  %v1799_v26 = vld.sshfl [vmem:[#allocation1] sm:$0xff pattern:$0x73625140]  ;;  %v162_v29 = vld [vmem:[%s2923_s1 + $0x458] sm:$0xff] }
  0x36   :  { %700 = vmatpush.msrb.mxu0 %v92_v39  ;;  %719 = vmatpush.msrb.mxu1 %v109_v40  ;;  %v1801_v27 = vld.sshfl [vmem:[#allocation1 + $0x10] sm:$0xff pattern:$0x73625140]  ;;  %v1803_v28 = vld.sshfl [vmem:[#allocation1 + $0x8] sm:$0xff pattern:$0x73625140] }
  0x37   :  { %740 = vmatpush.msrb.mxu2 %v124_v41  ;;  %759 = vmatpush.msrb.mxu3 %v141_v42  ;;  %v19_v30 = vld [vmem:[%s2922_s0 + $0x20] sm:$0xff]  ;;  %v1811_v31 = vld.sshfl [vmem:[#allocation1 + $0x18] sm:$0xff pattern:$0x73625140] }
  0x38   :  { %701 = vmatpush.msrb.mxu0 %v91_v44  ;;  %720 = vmatpush.msrb.mxu1 %v108_v45  ;;  %v179_v32 = vld [vmem:[%s2923_s1 + $0x4e0] sm:$0xff]  ;;  %v194_v33 = vld [vmem:[%s2923_s1 + $0x558] sm:$0xff]  ;;  %556 = vst [vmem:[#allocation1] ss:$4 sm:$0xff] %v19_v30 }
  0x39   :  { %741 = vmatpush.msrb.mxu2 %v123_v47  ;;  %760 = vmatpush.msrb.mxu3 %v140_v52  ;;  %v211_v34 = vld [vmem:[%s2923_s1 + $0x5e0] sm:$0xff] }
  0x3a   :  { %702 = vmatpush.msrb.mxu0 %v90_v53  ;;  %721 = vmatpush.msrb.mxu1 %v107_v54 }
  0x3b   :  { %742 = vmatpush.msrb.mxu2 %v122_v55  ;;  %761 = vmatpush.msrb.mxu3 %v139_v56 }
  0x3c   :  { %703 = vmatpush.msrb.mxu0 %v89_v57  ;;  %722 = vmatpush.msrb.mxu1 %v106_v58 }
  0x3d   :  { %743 = vmatpush.msrb.mxu2 %v121_v59  ;;  %762 = vmatpush.msrb.mxu3 %v138_v60 }
  0x3e   :  { %704 = vmatpush.msrb.mxu0 %v88_v61  ;;  %723 = vmatpush.msrb.mxu1 %v105_v62 }
  0x3f   :  { %744 = vmatpush.msrb.mxu2 %v120_v4  ;;  %763 = vmatpush.msrb.mxu3 %v137_v5 }
  0x40   :  { %705 = vmatpush.msrb.mxu0 %v87_v6  ;;  %724 = vmatpush.msrb.mxu1 %v104_v7 }
  0x41   :  { %745 = vmatpush.msrb.mxu2 %v119_v8  ;;  %764 = vmatpush.msrb.mxu3 %v136_v9 }
  0x42   :  { %626 = vmatmul.f32.vlgmr.msra.gmra.mxu0 %v538_v48  ;;  %666 = vmatmul.f32.vlgmr.msra.gmra.mxu2 %v540_v49 }
  0x43   :  { %770 = vmatpush.msra.mxu0 %v166_v10  ;;  %810 = vmatpush.msra.mxu2 %v198_v11 }
  0x44   :  { %725 = vmatpush.msrb.mxu1 %v103_v12  ;;  %765 = vmatpush.msrb.mxu3 %v135_v13 }
  0x45   :  { %646 = vmatmul.f32.vlgmr.msra.gmra.mxu1 %v1683_v50  ;;  %686 = vmatmul.f32.vlgmr.msra.gmra.mxu3 %v1685_v51 }
  0x46   :  { %771 = vmatpush.msra.mxu0 %v165_v14  ;;  %790 = vmatpush.msra.mxu1 %v182_v15 }
  0x47   :  { %811 = vmatpush.msra.mxu2 %v197_v16  ;;  %830 = vmatpush.msra.mxu3 %v214_v17 }
  0x48   :  { %772 = vmatpush.msra.mxu0 %v164_v18  ;;  %791 = vmatpush.msra.mxu1 %v181_v19 }
  0x49   :  { %812 = vmatpush.msra.mxu2 %v196_v20  ;;  %831 = vmatpush.msra.mxu3 %v213_v21 }
  0x4a   :  { %773 = vmatpush.msra.mxu0 %v163_v22  ;;  %792 = vmatpush.msra.mxu1 %v180_v23 }
  0x4b   :  { %813 = vmatpush.msra.mxu2 %v195_v24  ;;  %832 = vmatpush.msra.mxu3 %v212_v25 }
  0x4c   :  { %8 = vsyncpa [#allocation3], 0  ;;  %746 = vmatmul.f32.vlgmr.msrb.gmra.mxu2 %v1723_v0  ;;  %774 = vmatpush.msra.mxu0 %v162_v29  ;;  %v161_v35 = vld [vmem:[%s2923_s1 + $0x450] sm:$0xff]  ;;  %v178_v36 = vld [vmem:[%s2923_s1 + $0x4d8] sm:$0xff]  ;;  %vm607_vm0 = vcmask 261120   ;;  %vm1251_vm1 = vcmask 9216  }
  0x4d   :  { %793 = vmatpush.msra.mxu1 %v179_v32  ;;  %814 = vmatpush.msra.mxu2 %v194_v33  ;;  %v193_v37 = vld [vmem:[%s2923_s1 + $0x550] sm:$0xff]  ;;  %v210_v38 = vld [vmem:[%s2923_s1 + $0x5d8] sm:$0xff]  ;;  %v160_v39 = vld [vmem:[%s2923_s1 + $0x448] sm:$0xff]  ;;  %s1284_s28 = sshll.u32 %s2925_s3, 4  ;;  %s1285_s28 = int_to_ptr.hbm [resolvable:$true] %s1284_s28 }
  0x4e   :  { %833 = vmatpush.msra.mxu3 %v211_v34  ;;  %706 = vmatmul.f32.vlgmr.msrb.gmra.mxu0 %v1725_v1  ;;  %v177_v40 = vld [vmem:[%s2923_s1 + $0x4d0] sm:$0xff]  ;;  %v192_v41 = vld [vmem:[%s2923_s1 + $0x548] sm:$0xff]  ;;  %v159_v43 = vld [vmem:[%s2923_s1 + $0x440] sm:$0xff] }
  0x4f   :  { %766 = vmatmul.f32.vlgmr.msrb.gmra.mxu3 %v1727_v2  ;;  %775 = vmatpush.msra.mxu0 %v161_v35  ;;  %v209_v42 = vld [vmem:[%s2923_s1 + $0x5d0] sm:$0xff]  ;;  %v176_v44 = vld [vmem:[%s2923_s1 + $0x4c8] sm:$0xff]  ;;  %v191_v45 = vld [vmem:[%s2923_s1 + $0x540] sm:$0xff] }
  0x50   :  { %794 = vmatpush.msra.mxu1 %v178_v36  ;;  %815 = vmatpush.msra.mxu2 %v193_v37  ;;  %v208_v46 = vld [vmem:[%s2923_s1 + $0x5c8] sm:$0xff]  ;;  %v158_v47 = vld [vmem:[%s2923_s1 + $0x438] sm:$0xff]  ;;  %v175_v48 = vld [vmem:[%s2923_s1 + $0x4c0] sm:$0xff] }
  0x51   :  { %834 = vmatpush.msra.mxu3 %v210_v38  ;;  %726 = vmatmul.f32.vlgmr.msrb.gmra.mxu1 %v1729_v3  ;;  %v190_v49 = vld [vmem:[%s2923_s1 + $0x538] sm:$0xff]  ;;  %v207_v50 = vld [vmem:[%s2923_s1 + $0x5c0] sm:$0xff]  ;;  %v157_v51 = vld [vmem:[%s2923_s1 + $0x430] sm:$0xff] }
  0x52   :  { %776 = vmatpush.msra.mxu0 %v160_v39  ;;  %795 = vmatpush.msra.mxu1 %v177_v40  ;;  %v174_v52 = vld [vmem:[%s2923_s1 + $0x4b8] sm:$0xff]  ;;  %v189_v53 = vld [vmem:[%s2923_s1 + $0x530] sm:$0xff]  ;;  %v156_v55 = vld [vmem:[%s2923_s1 + $0x428] sm:$0xff] }
  0x53   :  { %816 = vmatpush.msra.mxu2 %v192_v41  ;;  %835 = vmatpush.msra.mxu3 %v209_v42  ;;  %v206_v54 = vld [vmem:[%s2923_s1 + $0x5b8] sm:$0xff]  ;;  %v173_v56 = vld [vmem:[%s2923_s1 + $0x4b0] sm:$0xff]  ;;  %v188_v57 = vld [vmem:[%s2923_s1 + $0x528] sm:$0xff] }
  0x54   :  { %777 = vmatpush.msra.mxu0 %v159_v43  ;;  %796 = vmatpush.msra.mxu1 %v176_v44  ;;  %v205_v58 = vld [vmem:[%s2923_s1 + $0x5b0] sm:$0xff]  ;;  %v155_v59 = vld [vmem:[%s2923_s1 + $0x420] sm:$0xff]  ;;  %v172_v60 = vld [vmem:[%s2923_s1 + $0x4a8] sm:$0xff] }
  0x55   :  { %817 = vmatpush.msra.mxu2 %v191_v45  ;;  %836 = vmatpush.msra.mxu3 %v208_v46  ;;  %v187_v61 = vld [vmem:[%s2923_s1 + $0x520] sm:$0xff]  ;;  %v204_v62 = vld [vmem:[%s2923_s1 + $0x5a8] sm:$0xff]  ;;  %v154_v63 = vld [vmem:[%s2923_s1 + $0x418] sm:$0xff] }
  0x56   :  { %778 = vmatpush.msra.mxu0 %v158_v47  ;;  %797 = vmatpush.msra.mxu1 %v175_v48  ;;  %v171_v0 = vld [vmem:[%s2923_s1 + $0x4a0] sm:$0xff]  ;;  %v186_v1 = vld [vmem:[%s2923_s1 + $0x518] sm:$0xff]  ;;  %v153_v3 = vld [vmem:[%s2923_s1 + $0x410] sm:$0xff] }
  0x57   :  { %818 = vmatpush.msra.mxu2 %v190_v49  ;;  %837 = vmatpush.msra.mxu3 %v207_v50  ;;  %v203_v2 = vld [vmem:[%s2923_s1 + $0x5a0] sm:$0xff]  ;;  %v170_v4 = vld [vmem:[%s2923_s1 + $0x498] sm:$0xff]  ;;  %v185_v5 = vld [vmem:[%s2923_s1 + $0x510] sm:$0xff] }
  0x58   :  { %779 = vmatpush.msra.mxu0 %v157_v51  ;;  %798 = vmatpush.msra.mxu1 %v174_v52  ;;  %v202_v6 = vld [vmem:[%s2923_s1 + $0x598] sm:$0xff]  ;;  %v152_v7 = vld [vmem:[%s2923_s1 + $0x408] sm:$0xff]  ;;  %v169_v8 = vld [vmem:[%s2923_s1 + $0x490] sm:$0xff] }
  0x59   :  { %819 = vmatpush.msra.mxu2 %v189_v53  ;;  %838 = vmatpush.msra.mxu3 %v206_v54  ;;  %v184_v9 = vld [vmem:[%s2923_s1 + $0x508] sm:$0xff]  ;;  %v201_v10 = vld [vmem:[%s2923_s1 + $0x590] sm:$0xff]  ;;  %v151_v11 = vld [vmem:[%s2923_s1 + $0x400] sm:$0xff] }
  0x5a   :  { %780 = vmatpush.msra.mxu0 %v156_v55  ;;  %799 = vmatpush.msra.mxu1 %v173_v56  ;;  %v168_v12 = vld [vmem:[%s2923_s1 + $0x488] sm:$0xff]  ;;  %v183_v13 = vld [vmem:[%s2923_s1 + $0x500] sm:$0xff]  ;;  %v230_v15 = vld [vmem:[%s2923_s1 + $0x678] sm:$0xff] }
  0x5b   :  { %820 = vmatpush.msra.mxu2 %v188_v57  ;;  %839 = vmatpush.msra.mxu3 %v205_v58  ;;  %v200_v14 = vld [vmem:[%s2923_s1 + $0x588] sm:$0xff]  ;;  %v262_v16 = vld [vmem:[%s2923_s1 + $0x778] sm:$0xff]  ;;  %v167_v17 = vld [vmem:[%s2923_s1 + $0x480] sm:$0xff] }
  0x5c   :  { %781 = vmatpush.msra.mxu0 %v155_v59  ;;  %800 = vmatpush.msra.mxu1 %v172_v60  ;;  %v199_v18 = vld [vmem:[%s2923_s1 + $0x580] sm:$0xff]  ;;  %v229_v19 = vld [vmem:[%s2923_s1 + $0x670] sm:$0xff]  ;;  %v246_v20 = vld [vmem:[%s2923_s1 + $0x6f8] sm:$0xff] }
  0x5d   :  { %821 = vmatpush.msra.mxu2 %v187_v61  ;;  %840 = vmatpush.msra.mxu3 %v204_v62  ;;  %v261_v21 = vld [vmem:[%s2923_s1 + $0x770] sm:$0xff]  ;;  %v278_v22 = vld [vmem:[%s2923_s1 + $0x7f8] sm:$0xff]  ;;  %v228_v23 = vld [vmem:[%s2923_s1 + $0x668] sm:$0xff] }
  0x5e   :  { %782 = vmatpush.msra.mxu0 %v154_v63  ;;  %801 = vmatpush.msra.mxu1 %v171_v0  ;;  %v245_v24 = vld [vmem:[%s2923_s1 + $0x6f0] sm:$0xff]  ;;  %v260_v25 = vld [vmem:[%s2923_s1 + $0x768] sm:$0xff]  ;;  %v2001_v29 = vld.sshfl [vmem:[#allocation1 + $0x20] sm:$0xff pattern:$0x73625140] }
  0x5f   :  { %822 = vmatpush.msra.mxu2 %v186_v1  ;;  %841 = vmatpush.msra.mxu3 %v203_v2  ;;  %v2003_v30 = vld.sshfl [vmem:[#allocation1 + $0x30] sm:$0xff pattern:$0x73625140]  ;;  %v2005_v32 = vld.sshfl [vmem:[#allocation1 + $0x28] sm:$0xff pattern:$0x73625140] }
  0x60   :  { %783 = vmatpush.msra.mxu0 %v153_v3  ;;  %802 = vmatpush.msra.mxu1 %v170_v4  ;;  %v2013_v33 = vld.sshfl [vmem:[#allocation1 + $0x38] sm:$0xff pattern:$0x73625140]  ;;  %v259_v34 = vld [vmem:[%s2923_s1 + $0x760] sm:$0xff]  ;;  %v276_v35 = vld [vmem:[%s2923_s1 + $0x7e8] sm:$0xff] }
  0x61   :  { %823 = vmatpush.msra.mxu2 %v185_v5  ;;  %842 = vmatpush.msra.mxu3 %v202_v6  ;;  %v226_v36 = vld [vmem:[%s2923_s1 + $0x658] sm:$0xff]  ;;  %v243_v37 = vld [vmem:[%s2923_s1 + $0x6e0] sm:$0xff]  ;;  %v225_v40 = vld [vmem:[%s2923_s1 + $0x650] sm:$0xff] }
  0x62   :  { %784 = vmatpush.msra.mxu0 %v152_v7  ;;  %803 = vmatpush.msra.mxu1 %v169_v8  ;;  %v258_v38 = vld [vmem:[%s2923_s1 + $0x758] sm:$0xff]  ;;  %v275_v39 = vld [vmem:[%s2923_s1 + $0x7e0] sm:$0xff]  ;;  %v257_v42 = vld [vmem:[%s2923_s1 + $0x750] sm:$0xff] }
  0x63   :  { %824 = vmatpush.msra.mxu2 %v184_v9  ;;  %843 = vmatpush.msra.mxu3 %v201_v10  ;;  %v242_v41 = vld [vmem:[%s2923_s1 + $0x6d8] sm:$0xff]  ;;  %v224_v44 = vld [vmem:[%s2923_s1 + $0x648] sm:$0xff]  ;;  %v241_v45 = vld [vmem:[%s2923_s1 + $0x6d0] sm:$0xff] }
  0x64   :  { %785 = vmatpush.msra.mxu0 %v151_v11  ;;  %804 = vmatpush.msra.mxu1 %v168_v12  ;;  %v274_v43 = vld [vmem:[%s2923_s1 + $0x7d8] sm:$0xff]  ;;  %v256_v46 = vld [vmem:[%s2923_s1 + $0x748] sm:$0xff]  ;;  %v273_v47 = vld [vmem:[%s2923_s1 + $0x7d0] sm:$0xff] }
  0x65   :  { %825 = vmatpush.msra.mxu2 %v183_v13  ;;  %844 = vmatpush.msra.mxu3 %v200_v14  ;;  %v223_v48 = vld [vmem:[%s2923_s1 + $0x640] sm:$0xff]  ;;  %v240_v49 = vld [vmem:[%s2923_s1 + $0x6c8] sm:$0xff]  ;;  %v222_v52 = vld [vmem:[%s2923_s1 + $0x638] sm:$0xff] }
  0x66   :  { %786 = vmatmul.f32.vlgmr.msra.gmra.mxu0 %v1799_v26  ;;  %826 = vmatmul.f32.vlgmr.msra.gmra.mxu2 %v1801_v27  ;;  %v277_v26 = vld [vmem:[%s2923_s1 + $0x7f0] sm:$0xff]  ;;  %v227_v27 = vld [vmem:[%s2923_s1 + $0x660] sm:$0xff]  ;;  %v272_v51 = vld [vmem:[%s2923_s1 + $0x7c8] sm:$0xff] }
  0x67   :  { %850 = vmatpush.msrb.mxu0 %v230_v15  ;;  %890 = vmatpush.msrb.mxu2 %v262_v16  ;;  %v255_v50 = vld [vmem:[%s2923_s1 + $0x740] sm:$0xff]  ;;  %v254_v54 = vld [vmem:[%s2923_s1 + $0x738] sm:$0xff]  ;;  %v221_v56 = vld [vmem:[%s2923_s1 + $0x630] sm:$0xff] }
  0x68   :  { %805 = vmatpush.msra.mxu1 %v167_v17  ;;  %845 = vmatpush.msra.mxu3 %v199_v18  ;;  %v239_v53 = vld [vmem:[%s2923_s1 + $0x6c0] sm:$0xff]  ;;  %v238_v57 = vld [vmem:[%s2923_s1 + $0x6b8] sm:$0xff]  ;;  %v253_v58 = vld [vmem:[%s2923_s1 + $0x730] sm:$0xff] }
  0x69   :  { %806 = vmatmul.f32.vlgmr.msra.gmra.mxu1 %v1803_v28  ;;  %846 = vmatmul.f32.vlgmr.msra.gmra.mxu3 %v1811_v31  ;;  %v244_v28 = vld [vmem:[%s2923_s1 + $0x6e8] sm:$0xff]  ;;  %v271_v55 = vld [vmem:[%s2923_s1 + $0x7c0] sm:$0xff]  ;;  %v270_v59 = vld [vmem:[%s2923_s1 + $0x7b8] sm:$0xff] }
  0x6a   :  { %851 = vmatpush.msrb.mxu0 %v229_v19  ;;  %870 = vmatpush.msrb.mxu1 %v246_v20  ;;  %v20_v31 = vld [vmem:[%s2922_s0 + $0x28] sm:$0xff]  ;;  %v237_v61 = vld [vmem:[%s2923_s1 + $0x6b0] sm:$0xff]  ;;  %v219_v0 = vld [vmem:[%s2923_s1 + $0x620] sm:$0xff] }
  0x6b   :  { %891 = vmatpush.msrb.mxu2 %v261_v21  ;;  %910 = vmatpush.msrb.mxu3 %v278_v22  ;;  %557 = vst [vmem:[#allocation1 + $0x20] ss:$4 sm:$0xff] %v20_v31  ;;  %v220_v60 = vld [vmem:[%s2923_s1 + $0x628] sm:$0xff]  ;;  %v269_v63 = vld [vmem:[%s2923_s1 + $0x7b0] sm:$0xff]  ;;  %v251_v2 = vld [vmem:[%s2923_s1 + $0x720] sm:$0xff] }
  0x6c   :  { %852 = vmatpush.msrb.mxu0 %v228_v23  ;;  %871 = vmatpush.msrb.mxu1 %v245_v24  ;;  %v252_v62 = vld [vmem:[%s2923_s1 + $0x728] sm:$0xff]  ;;  %v218_v4 = vld [vmem:[%s2923_s1 + $0x618] sm:$0xff]  ;;  %v235_v5 = vld [vmem:[%s2923_s1 + $0x6a0] sm:$0xff] }
  0x6d   :  { %892 = vmatpush.msrb.mxu2 %v260_v25  ;;  %911 = vmatpush.msrb.mxu3 %v277_v26  ;;  %v236_v1 = vld [vmem:[%s2923_s1 + $0x6a8] sm:$0xff]  ;;  %v250_v6 = vld [vmem:[%s2923_s1 + $0x718] sm:$0xff]  ;;  %v267_v7 = vld [vmem:[%s2923_s1 + $0x7a0] sm:$0xff] }
  0x6e   :  { %853 = vmatpush.msrb.mxu0 %v227_v27  ;;  %872 = vmatpush.msrb.mxu1 %v244_v28  ;;  %v268_v3 = vld [vmem:[%s2923_s1 + $0x7a8] sm:$0xff]  ;;  %v217_v8 = vld [vmem:[%s2923_s1 + $0x610] sm:$0xff]  ;;  %v234_v9 = vld [vmem:[%s2923_s1 + $0x698] sm:$0xff] }
  0x6f   :  { %893 = vmatpush.msrb.mxu2 %v259_v34  ;;  %912 = vmatpush.msrb.mxu3 %v276_v35  ;;  %v249_v10 = vld [vmem:[%s2923_s1 + $0x710] sm:$0xff]  ;;  %v266_v11 = vld [vmem:[%s2923_s1 + $0x798] sm:$0xff]  ;;  %v216_v12 = vld [vmem:[%s2923_s1 + $0x608] sm:$0xff] }
  0x70   :  { %854 = vmatpush.msrb.mxu0 %v226_v36  ;;  %873 = vmatpush.msrb.mxu1 %v243_v37  ;;  %v233_v13 = vld [vmem:[%s2923_s1 + $0x690] sm:$0xff]  ;;  %v248_v14 = vld [vmem:[%s2923_s1 + $0x708] sm:$0xff]  ;;  %v215_v16 = vld [vmem:[%s2923_s1 + $0x600] sm:$0xff] }
  0x71   :  { %894 = vmatpush.msrb.mxu2 %v258_v38  ;;  %913 = vmatpush.msrb.mxu3 %v275_v39  ;;  %v265_v15 = vld [vmem:[%s2923_s1 + $0x790] sm:$0xff]  ;;  %v232_v17 = vld [vmem:[%s2923_s1 + $0x688] sm:$0xff]  ;;  %v247_v18 = vld [vmem:[%s2923_s1 + $0x700] sm:$0xff] }
  0x72   :  { %855 = vmatpush.msrb.mxu0 %v225_v40  ;;  %874 = vmatpush.msrb.mxu1 %v242_v41  ;;  %v264_v19 = vld [vmem:[%s2923_s1 + $0x788] sm:$0xff]  ;;  %v294_v20 = vld [vmem:[%s2923_s1 + $0x878] sm:$0xff]  ;;  %v231_v22 = vld [vmem:[%s2923_s1 + $0x680] sm:$0xff] }
  0x73   :  { %895 = vmatpush.msrb.mxu2 %v257_v42  ;;  %914 = vmatpush.msrb.mxu3 %v274_v43  ;;  %v326_v21 = vld [vmem:[%s2923_s1 + $0x978] sm:$0xff]  ;;  %v263_v23 = vld [vmem:[%s2923_s1 + $0x780] sm:$0xff]  ;;  %v293_v24 = vld [vmem:[%s2923_s1 + $0x870] sm:$0xff] }
  0x74   :  { %856 = vmatpush.msrb.mxu0 %v224_v44  ;;  %875 = vmatpush.msrb.mxu1 %v241_v45  ;;  %v310_v25 = vld [vmem:[%s2923_s1 + $0x8f8] sm:$0xff]  ;;  %v325_v26 = vld [vmem:[%s2923_s1 + $0x970] sm:$0xff]  ;;  %v324_v28 = vld [vmem:[%s2923_s1 + $0x968] sm:$0xff] }
  0x75   :  { %896 = vmatpush.msrb.mxu2 %v256_v46  ;;  %915 = vmatpush.msrb.mxu3 %v273_v47  ;;  %v342_v27 = vld [vmem:[%s2923_s1 + $0x9f8] sm:$0xff]  ;;  %v291_v31 = vld [vmem:[%s2923_s1 + $0x860] sm:$0xff]  ;;  %v340_v35 = vld [vmem:[%s2923_s1 + $0x9e8] sm:$0xff] }
  0x76   :  { %857 = vmatpush.msrb.mxu0 %v223_v48  ;;  %876 = vmatpush.msrb.mxu1 %v240_v49  ;;  %v323_v34 = vld [vmem:[%s2923_s1 + $0x960] sm:$0xff]  ;;  %v290_v36 = vld [vmem:[%s2923_s1 + $0x858] sm:$0xff]  ;;  %v289_v40 = vld [vmem:[%s2923_s1 + $0x850] sm:$0xff] }
  0x77   :  { %897 = vmatpush.msrb.mxu2 %v255_v50  ;;  %916 = vmatpush.msrb.mxu3 %v272_v51  ;;  %v307_v37 = vld [vmem:[%s2923_s1 + $0x8e0] sm:$0xff]  ;;  %v322_v38 = vld [vmem:[%s2923_s1 + $0x958] sm:$0xff]  ;;  %v321_v42 = vld [vmem:[%s2923_s1 + $0x950] sm:$0xff] }
  0x78   :  { %858 = vmatpush.msrb.mxu0 %v222_v52  ;;  %877 = vmatpush.msrb.mxu1 %v239_v53  ;;  %v339_v39 = vld [vmem:[%s2923_s1 + $0x9e0] sm:$0xff]  ;;  %v306_v41 = vld [vmem:[%s2923_s1 + $0x8d8] sm:$0xff]  ;;  %v288_v44 = vld [vmem:[%s2923_s1 + $0x848] sm:$0xff] }
  0x79   :  { %898 = vmatpush.msrb.mxu2 %v254_v54  ;;  %917 = vmatpush.msrb.mxu3 %v271_v55  ;;  %v338_v43 = vld [vmem:[%s2923_s1 + $0x9d8] sm:$0xff]  ;;  %v305_v45 = vld [vmem:[%s2923_s1 + $0x8d0] sm:$0xff]  ;;  %v320_v46 = vld [vmem:[%s2923_s1 + $0x948] sm:$0xff] }
  0x7a   :  { %859 = vmatpush.msrb.mxu0 %v221_v56  ;;  %878 = vmatpush.msrb.mxu1 %v238_v57  ;;  %v337_v47 = vld [vmem:[%s2923_s1 + $0x9d0] sm:$0xff]  ;;  %v287_v48 = vld [vmem:[%s2923_s1 + $0x840] sm:$0xff]  ;;  %v304_v49 = vld [vmem:[%s2923_s1 + $0x8c8] sm:$0xff] }
  0x7b   :  { %899 = vmatpush.msrb.mxu2 %v253_v58  ;;  %918 = vmatpush.msrb.mxu3 %v270_v59  ;;  %v319_v50 = vld [vmem:[%s2923_s1 + $0x940] sm:$0xff]  ;;  %v336_v51 = vld [vmem:[%s2923_s1 + $0x9c8] sm:$0xff]  ;;  %v286_v52 = vld [vmem:[%s2923_s1 + $0x838] sm:$0xff] }
  0x7c   :  { %860 = vmatpush.msrb.mxu0 %v220_v60  ;;  %879 = vmatpush.msrb.mxu1 %v237_v61  ;;  %v303_v53 = vld [vmem:[%s2923_s1 + $0x8c0] sm:$0xff]  ;;  %v318_v54 = vld [vmem:[%s2923_s1 + $0x938] sm:$0xff]  ;;  %v285_v56 = vld [vmem:[%s2923_s1 + $0x830] sm:$0xff] }
  0x7d   :  { %900 = vmatpush.msrb.mxu2 %v252_v62  ;;  %919 = vmatpush.msrb.mxu3 %v269_v63  ;;  %v335_v55 = vld [vmem:[%s2923_s1 + $0x9c0] sm:$0xff]  ;;  %v302_v57 = vld [vmem:[%s2923_s1 + $0x8b8] sm:$0xff]  ;;  %v317_v58 = vld [vmem:[%s2923_s1 + $0x930] sm:$0xff] }
  0x7e   :  { %861 = vmatpush.msrb.mxu0 %v219_v0  ;;  %880 = vmatpush.msrb.mxu1 %v236_v1  ;;  %v334_v59 = vld [vmem:[%s2923_s1 + $0x9b8] sm:$0xff]  ;;  %v284_v60 = vld [vmem:[%s2923_s1 + $0x828] sm:$0xff]  ;;  %v301_v61 = vld [vmem:[%s2923_s1 + $0x8b0] sm:$0xff] }
  0x7f   :  { %901 = vmatpush.msrb.mxu2 %v251_v2  ;;  %920 = vmatpush.msrb.mxu3 %v268_v3  ;;  %v316_v62 = vld [vmem:[%s2923_s1 + $0x928] sm:$0xff]  ;;  %v333_v63 = vld [vmem:[%s2923_s1 + $0x9b0] sm:$0xff]  ;;  %v283_v0 = vld [vmem:[%s2923_s1 + $0x820] sm:$0xff] }
  0x80   :  { %862 = vmatpush.msrb.mxu0 %v218_v4  ;;  %881 = vmatpush.msrb.mxu1 %v235_v5  ;;  %v300_v1 = vld [vmem:[%s2923_s1 + $0x8a8] sm:$0xff]  ;;  %v315_v2 = vld [vmem:[%s2923_s1 + $0x920] sm:$0xff]  ;;  %v282_v4 = vld [vmem:[%s2923_s1 + $0x818] sm:$0xff] }
  0x81   :  { %902 = vmatpush.msrb.mxu2 %v250_v6  ;;  %921 = vmatpush.msrb.mxu3 %v267_v7  ;;  %v332_v3 = vld [vmem:[%s2923_s1 + $0x9a8] sm:$0xff]  ;;  %v299_v5 = vld [vmem:[%s2923_s1 + $0x8a0] sm:$0xff]  ;;  %v314_v6 = vld [vmem:[%s2923_s1 + $0x918] sm:$0xff] }
  0x82   :  { %863 = vmatpush.msrb.mxu0 %v217_v8  ;;  %882 = vmatpush.msrb.mxu1 %v234_v9  ;;  %v331_v7 = vld [vmem:[%s2923_s1 + $0x9a0] sm:$0xff]  ;;  %v281_v8 = vld [vmem:[%s2923_s1 + $0x810] sm:$0xff]  ;;  %v298_v9 = vld [vmem:[%s2923_s1 + $0x898] sm:$0xff] }
  0x83   :  { %903 = vmatpush.msrb.mxu2 %v249_v10  ;;  %922 = vmatpush.msrb.mxu3 %v266_v11  ;;  %v313_v10 = vld [vmem:[%s2923_s1 + $0x910] sm:$0xff]  ;;  %v330_v11 = vld [vmem:[%s2923_s1 + $0x998] sm:$0xff] }
  0x84   :  { %864 = vmatpush.msrb.mxu0 %v216_v12  ;;  %883 = vmatpush.msrb.mxu1 %v233_v13  ;;  %v280_v12 = vld [vmem:[%s2923_s1 + $0x808] sm:$0xff]  ;;  %v297_v13 = vld [vmem:[%s2923_s1 + $0x890] sm:$0xff] }
  0x85   :  { %904 = vmatpush.msrb.mxu2 %v248_v14  ;;  %923 = vmatpush.msrb.mxu3 %v265_v15  ;;  %v312_v14 = vld [vmem:[%s2923_s1 + $0x908] sm:$0xff]  ;;  %v329_v15 = vld [vmem:[%s2923_s1 + $0x990] sm:$0xff] }
  0x86   :  { %865 = vmatpush.msrb.mxu0 %v215_v16  ;;  %884 = vmatpush.msrb.mxu1 %v232_v17  ;;  %v279_v16 = vld [vmem:[%s2923_s1 + $0x800] sm:$0xff]  ;;  %v296_v17 = vld [vmem:[%s2923_s1 + $0x888] sm:$0xff] }
  0x87   :  { %905 = vmatpush.msrb.mxu2 %v247_v18  ;;  %924 = vmatpush.msrb.mxu3 %v264_v19  ;;  %v311_v18 = vld [vmem:[%s2923_s1 + $0x900] sm:$0xff]  ;;  %v328_v19 = vld [vmem:[%s2923_s1 + $0x988] sm:$0xff] }
  0x88   :  { %866 = vmatmul.f32.vlgmr.msrb.gmra.mxu0 %v2001_v29  ;;  %906 = vmatmul.f32.vlgmr.msrb.gmra.mxu2 %v2003_v30  ;;  %v292_v29 = vld [vmem:[%s2923_s1 + $0x868] sm:$0xff]  ;;  %v309_v30 = vld [vmem:[%s2923_s1 + $0x8f0] sm:$0xff] }
  0x89   :  { %930 = vmatpush.msra.mxu0 %v294_v20  ;;  %970 = vmatpush.msra.mxu2 %v326_v21  ;;  %v558_v20 = vld.sshfl [vmem:[#allocation1] sm:$0xff pattern:$0x73625140]  ;;  %v560_v21 = vld.sshfl [vmem:[#allocation1 + $0x10] sm:$0xff pattern:$0x73625140] }
  0x8a   :  { %885 = vmatpush.msrb.mxu1 %v231_v22  ;;  %925 = vmatpush.msrb.mxu3 %v263_v23  ;;  %v358_v22 = vld [vmem:[%s2923_s1 + $0xa78] sm:$0xff] }
  0x8b   :  { %886 = vmatmul.f32.vlgmr.msrb.gmra.mxu1 %v2005_v32  ;;  %926 = vmatmul.f32.vlgmr.msrb.gmra.mxu3 %v2013_v33  ;;  %v341_v32 = vld [vmem:[%s2923_s1 + $0x9f0] sm:$0xff]  ;;  %v308_v33 = vld [vmem:[%s2923_s1 + $0x8e8] sm:$0xff]  ;;  %v390_v23 = vld [vmem:[%s2923_s1 + $0xb78] sm:$0xff] }
  0x8c   :  { %931 = vmatpush.msra.mxu0 %v293_v24  ;;  %950 = vmatpush.msra.mxu1 %v310_v25  ;;  %v295_v24 = vld [vmem:[%s2923_s1 + $0x880] sm:$0xff] }
  0x8d   :  { %971 = vmatpush.msra.mxu2 %v325_v26  ;;  %990 = vmatpush.msra.mxu3 %v342_v27  ;;  %v327_v25 = vld [vmem:[%s2923_s1 + $0x980] sm:$0xff]  ;;  %v559_v26 = vld.sshfl [vmem:[#allocation1 + $0x8] sm:$0xff pattern:$0x73625140] }
  0x8e   :  { %932 = vmatpush.msra.mxu0 %v292_v29  ;;  %951 = vmatpush.msra.mxu1 %v309_v30  ;;  %v561_v27 = vld.sshfl [vmem:[#allocation1 + $0x18] sm:$0xff pattern:$0x73625140]  ;;  %v357_v29 = vld [vmem:[%s2923_s1 + $0xa70] sm:$0xff] }
  0x8f   :  { %972 = vmatpush.msra.mxu2 %v324_v28  ;;  %991 = vmatpush.msra.mxu3 %v341_v32  ;;  %v374_v30 = vld [vmem:[%s2923_s1 + $0xaf8] sm:$0xff]  ;;  %v389_v28 = vld [vmem:[%s2923_s1 + $0xb70] sm:$0xff] }
  0x90   :  { %933 = vmatpush.msra.mxu0 %v291_v31  ;;  %952 = vmatpush.msra.mxu1 %v308_v33  ;;  %v406_v32 = vld [vmem:[%s2923_s1 + $0xbf8] sm:$0xff]  ;;  %v356_v31 = vld [vmem:[%s2923_s1 + $0xa68] sm:$0xff]  ;;  %v373_v33 = vld [vmem:[%s2923_s1 + $0xaf0] sm:$0xff] }
  0x91   :  { %973 = vmatpush.msra.mxu2 %v323_v34  ;;  %992 = vmatpush.msra.mxu3 %v340_v35  ;;  %v388_v34 = vld [vmem:[%s2923_s1 + $0xb68] sm:$0xff]  ;;  %v405_v35 = vld [vmem:[%s2923_s1 + $0xbf0] sm:$0xff] }
  0x92   :  { %934 = vmatpush.msra.mxu0 %v290_v36  ;;  %953 = vmatpush.msra.mxu1 %v307_v37  ;;  %v355_v36 = vld [vmem:[%s2923_s1 + $0xa60] sm:$0xff]  ;;  %v372_v37 = vld [vmem:[%s2923_s1 + $0xae8] sm:$0xff] }
  0x93   :  { %974 = vmatpush.msra.mxu2 %v322_v38  ;;  %993 = vmatpush.msra.mxu3 %v339_v39  ;;  %v387_v38 = vld [vmem:[%s2923_s1 + $0xb60] sm:$0xff]  ;;  %v404_v39 = vld [vmem:[%s2923_s1 + $0xbe8] sm:$0xff] }
  0x94   :  { %935 = vmatpush.msra.mxu0 %v289_v40  ;;  %954 = vmatpush.msra.mxu1 %v306_v41  ;;  %v354_v40 = vld [vmem:[%s2923_s1 + $0xa58] sm:$0xff]  ;;  %v371_v41 = vld [vmem:[%s2923_s1 + $0xae0] sm:$0xff] }
  0x95   :  { %975 = vmatpush.msra.mxu2 %v321_v42  ;;  %994 = vmatpush.msra.mxu3 %v338_v43  ;;  %v386_v42 = vld [vmem:[%s2923_s1 + $0xb58] sm:$0xff]  ;;  %v403_v43 = vld [vmem:[%s2923_s1 + $0xbe0] sm:$0xff] }
  0x96   :  { %936 = vmatpush.msra.mxu0 %v288_v44  ;;  %955 = vmatpush.msra.mxu1 %v305_v45  ;;  %v353_v44 = vld [vmem:[%s2923_s1 + $0xa50] sm:$0xff]  ;;  %v370_v45 = vld [vmem:[%s2923_s1 + $0xad8] sm:$0xff] }
  0x97   :  { %976 = vmatpush.msra.mxu2 %v320_v46  ;;  %995 = vmatpush.msra.mxu3 %v337_v47  ;;  %v385_v46 = vld [vmem:[%s2923_s1 + $0xb50] sm:$0xff]  ;;  %v402_v47 = vld [vmem:[%s2923_s1 + $0xbd8] sm:$0xff] }
  0x98   :  { %937 = vmatpush.msra.mxu0 %v287_v48  ;;  %956 = vmatpush.msra.mxu1 %v304_v49  ;;  %v352_v48 = vld [vmem:[%s2923_s1 + $0xa48] sm:$0xff]  ;;  %v369_v49 = vld [vmem:[%s2923_s1 + $0xad0] sm:$0xff] }
  0x99   :  { %977 = vmatpush.msra.mxu2 %v319_v50  ;;  %996 = vmatpush.msra.mxu3 %v336_v51  ;;  %v384_v50 = vld [vmem:[%s2923_s1 + $0xb48] sm:$0xff]  ;;  %v401_v51 = vld [vmem:[%s2923_s1 + $0xbd0] sm:$0xff] }
  0x9a   :  { %938 = vmatpush.msra.mxu0 %v286_v52  ;;  %957 = vmatpush.msra.mxu1 %v303_v53  ;;  %v351_v52 = vld [vmem:[%s2923_s1 + $0xa40] sm:$0xff]  ;;  %v368_v53 = vld [vmem:[%s2923_s1 + $0xac8] sm:$0xff] }
  0x9b   :  { %978 = vmatpush.msra.mxu2 %v318_v54  ;;  %997 = vmatpush.msra.mxu3 %v335_v55  ;;  %v383_v54 = vld [vmem:[%s2923_s1 + $0xb40] sm:$0xff]  ;;  %v400_v55 = vld [vmem:[%s2923_s1 + $0xbc8] sm:$0xff] }
  0x9c   :  { %939 = vmatpush.msra.mxu0 %v285_v56  ;;  %958 = vmatpush.msra.mxu1 %v302_v57  ;;  %v350_v56 = vld [vmem:[%s2923_s1 + $0xa38] sm:$0xff]  ;;  %v367_v57 = vld [vmem:[%s2923_s1 + $0xac0] sm:$0xff] }
  0x9d   :  { %979 = vmatpush.msra.mxu2 %v317_v58  ;;  %998 = vmatpush.msra.mxu3 %v334_v59  ;;  %v382_v58 = vld [vmem:[%s2923_s1 + $0xb38] sm:$0xff]  ;;  %v399_v59 = vld [vmem:[%s2923_s1 + $0xbc0] sm:$0xff] }
  0x9e   :  { %940 = vmatpush.msra.mxu0 %v284_v60  ;;  %959 = vmatpush.msra.mxu1 %v301_v61  ;;  %v349_v60 = vld [vmem:[%s2923_s1 + $0xa30] sm:$0xff]  ;;  %v366_v61 = vld [vmem:[%s2923_s1 + $0xab8] sm:$0xff] }
  0x9f   :  { %980 = vmatpush.msra.mxu2 %v316_v62  ;;  %999 = vmatpush.msra.mxu3 %v333_v63  ;;  %v381_v62 = vld [vmem:[%s2923_s1 + $0xb30] sm:$0xff]  ;;  %v398_v63 = vld [vmem:[%s2923_s1 + $0xbb8] sm:$0xff] }
  0xa0   :  { %941 = vmatpush.msra.mxu0 %v283_v0  ;;  %960 = vmatpush.msra.mxu1 %v300_v1  ;;  %v348_v0 = vld [vmem:[%s2923_s1 + $0xa28] sm:$0xff]  ;;  %v365_v1 = vld [vmem:[%s2923_s1 + $0xab0] sm:$0xff] }
  0xa1   :  { %981 = vmatpush.msra.mxu2 %v315_v2  ;;  %1000 = vmatpush.msra.mxu3 %v332_v3  ;;  %v380_v2 = vld [vmem:[%s2923_s1 + $0xb28] sm:$0xff]  ;;  %v397_v3 = vld [vmem:[%s2923_s1 + $0xbb0] sm:$0xff] }
  0xa2   :  { %942 = vmatpush.msra.mxu0 %v282_v4  ;;  %961 = vmatpush.msra.mxu1 %v299_v5  ;;  %v347_v4 = vld [vmem:[%s2923_s1 + $0xa20] sm:$0xff]  ;;  %v364_v5 = vld [vmem:[%s2923_s1 + $0xaa8] sm:$0xff] }
  0xa3   :  { %982 = vmatpush.msra.mxu2 %v314_v6  ;;  %1001 = vmatpush.msra.mxu3 %v331_v7  ;;  %v379_v6 = vld [vmem:[%s2923_s1 + $0xb20] sm:$0xff]  ;;  %v396_v7 = vld [vmem:[%s2923_s1 + $0xba8] sm:$0xff] }
  0xa4   :  { %943 = vmatpush.msra.mxu0 %v281_v8  ;;  %962 = vmatpush.msra.mxu1 %v298_v9  ;;  %v346_v8 = vld [vmem:[%s2923_s1 + $0xa18] sm:$0xff]  ;;  %v363_v9 = vld [vmem:[%s2923_s1 + $0xaa0] sm:$0xff] }
  0xa5   :  { %983 = vmatpush.msra.mxu2 %v313_v10  ;;  %1002 = vmatpush.msra.mxu3 %v330_v11  ;;  %v378_v10 = vld [vmem:[%s2923_s1 + $0xb18] sm:$0xff]  ;;  %v395_v11 = vld [vmem:[%s2923_s1 + $0xba0] sm:$0xff] }
  0xa6   :  { %944 = vmatpush.msra.mxu0 %v280_v12  ;;  %963 = vmatpush.msra.mxu1 %v297_v13  ;;  %v345_v12 = vld [vmem:[%s2923_s1 + $0xa10] sm:$0xff]  ;;  %v362_v13 = vld [vmem:[%s2923_s1 + $0xa98] sm:$0xff] }
  0xa7   :  { %984 = vmatpush.msra.mxu2 %v312_v14  ;;  %1003 = vmatpush.msra.mxu3 %v329_v15  ;;  %v377_v14 = vld [vmem:[%s2923_s1 + $0xb10] sm:$0xff]  ;;  %v394_v15 = vld [vmem:[%s2923_s1 + $0xb98] sm:$0xff] }
  0xa8   :  { %945 = vmatpush.msra.mxu0 %v279_v16  ;;  %964 = vmatpush.msra.mxu1 %v296_v17  ;;  %v344_v16 = vld [vmem:[%s2923_s1 + $0xa08] sm:$0xff]  ;;  %v361_v17 = vld [vmem:[%s2923_s1 + $0xa90] sm:$0xff] }
  0xa9   :  { %985 = vmatpush.msra.mxu2 %v311_v18  ;;  %1004 = vmatpush.msra.mxu3 %v328_v19  ;;  %v21_v18 = vld [vmem:[%s2922_s0 + $0x30] sm:$0xff]  ;;  %v376_v19 = vld [vmem:[%s2923_s1 + $0xb08] sm:$0xff] }
  0xaa   :  { %946 = vmatmul.f32.vlgmr.msra.gmra.mxu0 %v558_v20  ;;  %986 = vmatmul.f32.vlgmr.msra.gmra.mxu2 %v560_v21  ;;  %v393_v20 = vld [vmem:[%s2923_s1 + $0xb90] sm:$0xff]  ;;  %566 = vst [vmem:[#allocation1] ss:$4 sm:$0xff] %v21_v18  ;;  %v343_v21 = vld [vmem:[%s2923_s1 + $0xa00] sm:$0xff]  ;;  %v426_v18 = vld [vmem:[%s2923_s1 + $0xc98] sm:$0xff] }
  0xab   :  { %1010 = vmatpush.msrb.mxu0 %v358_v22  ;;  %1050 = vmatpush.msrb.mxu2 %v390_v23  ;;  %v360_v22 = vld [vmem:[%s2923_s1 + $0xa88] sm:$0xff]  ;;  %v375_v23 = vld [vmem:[%s2923_s1 + $0xb00] sm:$0xff] }
  0xac   :  { %965 = vmatpush.msra.mxu1 %v295_v24  ;;  %1005 = vmatpush.msra.mxu3 %v327_v25  ;;  %v392_v24 = vld [vmem:[%s2923_s1 + $0xb88] sm:$0xff]  ;;  %v562_v25 = vld.sshfl [vmem:[#allocation1 + $0x20] sm:$0xff pattern:$0x73625140] }
  0xad   :  { %966 = vmatmul.f32.vlgmr.msra.gmra.mxu1 %v559_v26  ;;  %1006 = vmatmul.f32.vlgmr.msra.gmra.mxu3 %v561_v27  ;;  %v564_v26 = vld.sshfl [vmem:[#allocation1 + $0x30] sm:$0xff pattern:$0x73625140]  ;;  %v422_v27 = vld [vmem:[%s2923_s1 + $0xc78] sm:$0xff] }
  0xae   :  { %1011 = vmatpush.msrb.mxu0 %v357_v29  ;;  %1030 = vmatpush.msrb.mxu1 %v374_v30  ;;  %v454_v29 = vld [vmem:[%s2923_s1 + $0xd78] sm:$0xff]  ;;  %v359_v30 = vld [vmem:[%s2923_s1 + $0xa80] sm:$0xff] }
  0xaf   :  { %1051 = vmatpush.msrb.mxu2 %v389_v28  ;;  %1070 = vmatpush.msrb.mxu3 %v406_v32  ;;  %v391_v28 = vld [vmem:[%s2923_s1 + $0xb80] sm:$0xff]  ;;  %v563_v32 = vld.sshfl [vmem:[#allocation1 + $0x28] sm:$0xff pattern:$0x73625140] }
  0xb0   :  { %1012 = vmatpush.msrb.mxu0 %v356_v31  ;;  %1031 = vmatpush.msrb.mxu1 %v373_v33  ;;  %v565_v31 = vld.sshfl [vmem:[#allocation1 + $0x38] sm:$0xff pattern:$0x73625140]  ;;  %v421_v33 = vld [vmem:[%s2923_s1 + $0xc70] sm:$0xff] }
  0xb1   :  { %1052 = vmatpush.msrb.mxu2 %v388_v34  ;;  %1071 = vmatpush.msrb.mxu3 %v405_v35  ;;  %v438_v34 = vld [vmem:[%s2923_s1 + $0xcf8] sm:$0xff]  ;;  %v453_v35 = vld [vmem:[%s2923_s1 + $0xd70] sm:$0xff] }
  0xb2   :  { %1013 = vmatpush.msrb.mxu0 %v355_v36  ;;  %1032 = vmatpush.msrb.mxu1 %v372_v37  ;;  %v470_v36 = vld [vmem:[%s2923_s1 + $0xdf8] sm:$0xff]  ;;  %v420_v37 = vld [vmem:[%s2923_s1 + $0xc68] sm:$0xff] }
  0xb3   :  { %1053 = vmatpush.msrb.mxu2 %v387_v38  ;;  %1072 = vmatpush.msrb.mxu3 %v404_v39  ;;  %v437_v38 = vld [vmem:[%s2923_s1 + $0xcf0] sm:$0xff]  ;;  %v452_v39 = vld [vmem:[%s2923_s1 + $0xd68] sm:$0xff] }
  0xb4   :  { %1014 = vmatpush.msrb.mxu0 %v354_v40  ;;  %1033 = vmatpush.msrb.mxu1 %v371_v41  ;;  %v469_v40 = vld [vmem:[%s2923_s1 + $0xdf0] sm:$0xff]  ;;  %v419_v41 = vld [vmem:[%s2923_s1 + $0xc60] sm:$0xff] }
  0xb5   :  { %1054 = vmatpush.msrb.mxu2 %v386_v42  ;;  %1073 = vmatpush.msrb.mxu3 %v403_v43  ;;  %v436_v42 = vld [vmem:[%s2923_s1 + $0xce8] sm:$0xff]  ;;  %v451_v43 = vld [vmem:[%s2923_s1 + $0xd60] sm:$0xff] }
  0xb6   :  { %1015 = vmatpush.msrb.mxu0 %v353_v44  ;;  %1034 = vmatpush.msrb.mxu1 %v370_v45  ;;  %v468_v44 = vld [vmem:[%s2923_s1 + $0xde8] sm:$0xff]  ;;  %v418_v45 = vld [vmem:[%s2923_s1 + $0xc58] sm:$0xff] }
  0xb7   :  { %1055 = vmatpush.msrb.mxu2 %v385_v46  ;;  %1074 = vmatpush.msrb.mxu3 %v402_v47  ;;  %v435_v46 = vld [vmem:[%s2923_s1 + $0xce0] sm:$0xff]  ;;  %v450_v47 = vld [vmem:[%s2923_s1 + $0xd58] sm:$0xff] }
  0xb8   :  { %1016 = vmatpush.msrb.mxu0 %v352_v48  ;;  %1035 = vmatpush.msrb.mxu1 %v369_v49  ;;  %v467_v48 = vld [vmem:[%s2923_s1 + $0xde0] sm:$0xff]  ;;  %v417_v49 = vld [vmem:[%s2923_s1 + $0xc50] sm:$0xff] }
  0xb9   :  { %1056 = vmatpush.msrb.mxu2 %v384_v50  ;;  %1075 = vmatpush.msrb.mxu3 %v401_v51  ;;  %v434_v50 = vld [vmem:[%s2923_s1 + $0xcd8] sm:$0xff]  ;;  %v449_v51 = vld [vmem:[%s2923_s1 + $0xd50] sm:$0xff] }
  0xba   :  { %1017 = vmatpush.msrb.mxu0 %v351_v52  ;;  %1036 = vmatpush.msrb.mxu1 %v368_v53  ;;  %v466_v52 = vld [vmem:[%s2923_s1 + $0xdd8] sm:$0xff]  ;;  %v416_v53 = vld [vmem:[%s2923_s1 + $0xc48] sm:$0xff] }
  0xbb   :  { %1057 = vmatpush.msrb.mxu2 %v383_v54  ;;  %1076 = vmatpush.msrb.mxu3 %v400_v55  ;;  %v433_v54 = vld [vmem:[%s2923_s1 + $0xcd0] sm:$0xff]  ;;  %v448_v55 = vld [vmem:[%s2923_s1 + $0xd48] sm:$0xff] }
  0xbc   :  { %1018 = vmatpush.msrb.mxu0 %v350_v56  ;;  %1037 = vmatpush.msrb.mxu1 %v367_v57  ;;  %v465_v56 = vld [vmem:[%s2923_s1 + $0xdd0] sm:$0xff]  ;;  %v415_v57 = vld [vmem:[%s2923_s1 + $0xc40] sm:$0xff] }
  0xbd   :  { %1058 = vmatpush.msrb.mxu2 %v382_v58  ;;  %1077 = vmatpush.msrb.mxu3 %v399_v59  ;;  %v432_v58 = vld [vmem:[%s2923_s1 + $0xcc8] sm:$0xff]  ;;  %v447_v59 = vld [vmem:[%s2923_s1 + $0xd40] sm:$0xff] }
  0xbe   :  { %1019 = vmatpush.msrb.mxu0 %v349_v60  ;;  %1038 = vmatpush.msrb.mxu1 %v366_v61  ;;  %v464_v60 = vld [vmem:[%s2923_s1 + $0xdc8] sm:$0xff]  ;;  %v414_v61 = vld [vmem:[%s2923_s1 + $0xc38] sm:$0xff] }
  0xbf   :  { %1059 = vmatpush.msrb.mxu2 %v381_v62  ;;  %1078 = vmatpush.msrb.mxu3 %v398_v63  ;;  %v431_v62 = vld [vmem:[%s2923_s1 + $0xcc0] sm:$0xff]  ;;  %v446_v63 = vld [vmem:[%s2923_s1 + $0xd38] sm:$0xff] }
  0xc0   :  { %1020 = vmatpush.msrb.mxu0 %v348_v0  ;;  %1039 = vmatpush.msrb.mxu1 %v365_v1  ;;  %v463_v0 = vld [vmem:[%s2923_s1 + $0xdc0] sm:$0xff]  ;;  %v413_v1 = vld [vmem:[%s2923_s1 + $0xc30] sm:$0xff] }
  0xc1   :  { %1060 = vmatpush.msrb.mxu2 %v380_v2  ;;  %1079 = vmatpush.msrb.mxu3 %v397_v3  ;;  %v430_v2 = vld [vmem:[%s2923_s1 + $0xcb8] sm:$0xff]  ;;  %v445_v3 = vld [vmem:[%s2923_s1 + $0xd30] sm:$0xff] }
  0xc2   :  { %1021 = vmatpush.msrb.mxu0 %v347_v4  ;;  %1040 = vmatpush.msrb.mxu1 %v364_v5  ;;  %v462_v4 = vld [vmem:[%s2923_s1 + $0xdb8] sm:$0xff]  ;;  %v412_v5 = vld [vmem:[%s2923_s1 + $0xc28] sm:$0xff] }
  0xc3   :  { %1061 = vmatpush.msrb.mxu2 %v379_v6  ;;  %1080 = vmatpush.msrb.mxu3 %v396_v7  ;;  %v429_v6 = vld [vmem:[%s2923_s1 + $0xcb0] sm:$0xff]  ;;  %v444_v7 = vld [vmem:[%s2923_s1 + $0xd28] sm:$0xff] }
  0xc4   :  { %1022 = vmatpush.msrb.mxu0 %v346_v8  ;;  %1041 = vmatpush.msrb.mxu1 %v363_v9  ;;  %v461_v8 = vld [vmem:[%s2923_s1 + $0xdb0] sm:$0xff]  ;;  %v411_v9 = vld [vmem:[%s2923_s1 + $0xc20] sm:$0xff] }
  0xc5   :  { %1062 = vmatpush.msrb.mxu2 %v378_v10  ;;  %1081 = vmatpush.msrb.mxu3 %v395_v11  ;;  %v428_v10 = vld [vmem:[%s2923_s1 + $0xca8] sm:$0xff]  ;;  %v443_v11 = vld [vmem:[%s2923_s1 + $0xd20] sm:$0xff] }
  0xc6   :  { %1023 = vmatpush.msrb.mxu0 %v345_v12  ;;  %1042 = vmatpush.msrb.mxu1 %v362_v13  ;;  %v460_v12 = vld [vmem:[%s2923_s1 + $0xda8] sm:$0xff]  ;;  %v410_v13 = vld [vmem:[%s2923_s1 + $0xc18] sm:$0xff] }
  0xc7   :  { %1063 = vmatpush.msrb.mxu2 %v377_v14  ;;  %1082 = vmatpush.msrb.mxu3 %v394_v15  ;;  %v427_v14 = vld [vmem:[%s2923_s1 + $0xca0] sm:$0xff]  ;;  %v442_v15 = vld [vmem:[%s2923_s1 + $0xd18] sm:$0xff] }
  0xc8   :  { %1024 = vmatpush.msrb.mxu0 %v344_v16  ;;  %1043 = vmatpush.msrb.mxu1 %v361_v17  ;;  %v459_v16 = vld [vmem:[%s2923_s1 + $0xda0] sm:$0xff]  ;;  %v409_v17 = vld [vmem:[%s2923_s1 + $0xc10] sm:$0xff] }
  0xc9   :  { %1064 = vmatpush.msrb.mxu2 %v376_v19  ;;  %1083 = vmatpush.msrb.mxu3 %v393_v20  ;;  %v441_v19 = vld [vmem:[%s2923_s1 + $0xd10] sm:$0xff]  ;;  %v458_v20 = vld [vmem:[%s2923_s1 + $0xd98] sm:$0xff] }
  0xca   :  { %1025 = vmatpush.msrb.mxu0 %v343_v21  ;;  %1044 = vmatpush.msrb.mxu1 %v360_v22  ;;  %v408_v21 = vld [vmem:[%s2923_s1 + $0xc08] sm:$0xff]  ;;  %v425_v22 = vld [vmem:[%s2923_s1 + $0xc90] sm:$0xff] }
  0xcb   :  { %1065 = vmatpush.msrb.mxu2 %v375_v23  ;;  %1084 = vmatpush.msrb.mxu3 %v392_v24  ;;  %v22_v23 = vld [vmem:[%s2922_s0 + $0x38] sm:$0xff]  ;;  %v440_v24 = vld [vmem:[%s2923_s1 + $0xd08] sm:$0xff] }
  0xcc   :  { %1026 = vmatmul.f32.vlgmr.msrb.gmra.mxu0 %v562_v25  ;;  %1066 = vmatmul.f32.vlgmr.msrb.gmra.mxu2 %v564_v26  ;;  %v457_v25 = vld [vmem:[%s2923_s1 + $0xd90] sm:$0xff]  ;;  %567 = vst [vmem:[#allocation1 + $0x20] ss:$4 sm:$0xff] %v22_v23  ;;  %v407_v26 = vld [vmem:[%s2923_s1 + $0xc00] sm:$0xff] }
  0xcd   :  { %1090 = vmatpush.msra.mxu0 %v422_v27  ;;  %1130 = vmatpush.msra.mxu2 %v454_v29  ;;  %v424_v27 = vld [vmem:[%s2923_s1 + $0xc88] sm:$0xff]  ;;  %v439_v29 = vld [vmem:[%s2923_s1 + $0xd00] sm:$0xff] }
  0xce   :  { %1045 = vmatpush.msrb.mxu1 %v359_v30  ;;  %1085 = vmatpush.msrb.mxu3 %v391_v28  ;;  %v456_v30 = vld [vmem:[%s2923_s1 + $0xd88] sm:$0xff]  ;;  %v568_v28 = vld.sshfl [vmem:[#allocation1] sm:$0xff pattern:$0x73625140] }
  0xcf   :  { %1046 = vmatmul.f32.vlgmr.msrb.gmra.mxu1 %v563_v32  ;;  %1086 = vmatmul.f32.vlgmr.msrb.gmra.mxu3 %v565_v31  ;;  %v570_v32 = vld.sshfl [vmem:[#allocation1 + $0x10] sm:$0xff pattern:$0x73625140]  ;;  %v486_v31 = vld [vmem:[%s2923_s1 + $0xe78] sm:$0xff]  ;;  %v503_v23 = vld [vmem:[%s2923_s1 + $0xf00] sm:$0xff] }
  0xd0   :  { %1091 = vmatpush.msra.mxu0 %v421_v33  ;;  %1110 = vmatpush.msra.mxu1 %v438_v34  ;;  %v518_v33 = vld [vmem:[%s2923_s1 + $0xf78] sm:$0xff]  ;;  %v423_v34 = vld [vmem:[%s2923_s1 + $0xc80] sm:$0xff] }
  0xd1   :  { %1131 = vmatpush.msra.mxu2 %v453_v35  ;;  %1150 = vmatpush.msra.mxu3 %v470_v36  ;;  %v455_v35 = vld [vmem:[%s2923_s1 + $0xd80] sm:$0xff]  ;;  %v569_v36 = vld.sshfl [vmem:[#allocation1 + $0x8] sm:$0xff pattern:$0x73625140] }
  0xd2   :  { %1092 = vmatpush.msra.mxu0 %v420_v37  ;;  %1111 = vmatpush.msra.mxu1 %v437_v38  ;;  %v571_v37 = vld.sshfl [vmem:[#allocation1 + $0x18] sm:$0xff pattern:$0x73625140]  ;;  %v485_v38 = vld [vmem:[%s2923_s1 + $0xe70] sm:$0xff] }
  0xd3   :  { %1132 = vmatpush.msra.mxu2 %v452_v39  ;;  %1151 = vmatpush.msra.mxu3 %v469_v40  ;;  %v502_v39 = vld [vmem:[%s2923_s1 + $0xef8] sm:$0xff]  ;;  %v517_v40 = vld [vmem:[%s2923_s1 + $0xf70] sm:$0xff] }
  0xd4   :  { %1093 = vmatpush.msra.mxu0 %v419_v41  ;;  %1112 = vmatpush.msra.mxu1 %v436_v42  ;;  %v522_v41 = vld [vmem:[%s2923_s1 + $0xf98] sm:$0xff]  ;;  %v484_v42 = vld [vmem:[%s2923_s1 + $0xe68] sm:$0xff] }
  0xd5   :  { %1133 = vmatpush.msra.mxu2 %v451_v43  ;;  %1152 = vmatpush.msra.mxu3 %v468_v44  ;;  %v501_v43 = vld [vmem:[%s2923_s1 + $0xef0] sm:$0xff]  ;;  %v516_v44 = vld [vmem:[%s2923_s1 + $0xf68] sm:$0xff] }
  0xd6   :  { %1094 = vmatpush.msra.mxu0 %v418_v45  ;;  %1113 = vmatpush.msra.mxu1 %v435_v46  ;;  %v521_v45 = vld [vmem:[%s2923_s1 + $0xf90] sm:$0xff]  ;;  %v483_v46 = vld [vmem:[%s2923_s1 + $0xe60] sm:$0xff] }
  0xd7   :  { %1134 = vmatpush.msra.mxu2 %v450_v47  ;;  %1153 = vmatpush.msra.mxu3 %v467_v48  ;;  %v500_v47 = vld [vmem:[%s2923_s1 + $0xee8] sm:$0xff]  ;;  %v515_v48 = vld [vmem:[%s2923_s1 + $0xf60] sm:$0xff] }
  0xd8   :  { %1095 = vmatpush.msra.mxu0 %v417_v49  ;;  %1114 = vmatpush.msra.mxu1 %v434_v50  ;;  %v520_v49 = vld [vmem:[%s2923_s1 + $0xf88] sm:$0xff]  ;;  %v482_v50 = vld [vmem:[%s2923_s1 + $0xe58] sm:$0xff] }
  0xd9   :  { %1135 = vmatpush.msra.mxu2 %v449_v51  ;;  %1154 = vmatpush.msra.mxu3 %v466_v52  ;;  %v499_v51 = vld [vmem:[%s2923_s1 + $0xee0] sm:$0xff]  ;;  %v514_v52 = vld [vmem:[%s2923_s1 + $0xf58] sm:$0xff] }
  0xda   :  { %1096 = vmatpush.msra.mxu0 %v416_v53  ;;  %1115 = vmatpush.msra.mxu1 %v433_v54  ;;  %v519_v53 = vld [vmem:[%s2923_s1 + $0xf80] sm:$0xff]  ;;  %v481_v54 = vld [vmem:[%s2923_s1 + $0xe50] sm:$0xff] }
  0xdb   :  { %1136 = vmatpush.msra.mxu2 %v448_v55  ;;  %1155 = vmatpush.msra.mxu3 %v465_v56  ;;  %v498_v55 = vld [vmem:[%s2923_s1 + $0xed8] sm:$0xff]  ;;  %v513_v56 = vld [vmem:[%s2923_s1 + $0xf50] sm:$0xff] }
  0xdc   :  { %1097 = vmatpush.msra.mxu0 %v415_v57  ;;  %1116 = vmatpush.msra.mxu1 %v432_v58  ;;  %v575_v57 = vld.sshfl [vmem:[#allocation1 + $0x38] sm:$0xff pattern:$0x73625140]  ;;  %v480_v58 = vld [vmem:[%s2923_s1 + $0xe48] sm:$0xff] }
  0xdd   :  { %1137 = vmatpush.msra.mxu2 %v447_v59  ;;  %1156 = vmatpush.msra.mxu3 %v464_v60  ;;  %v497_v59 = vld [vmem:[%s2923_s1 + $0xed0] sm:$0xff]  ;;  %v512_v60 = vld [vmem:[%s2923_s1 + $0xf48] sm:$0xff] }
  0xde   :  { %1098 = vmatpush.msra.mxu0 %v414_v61  ;;  %1117 = vmatpush.msra.mxu1 %v431_v62  ;;  %v479_v61 = vld [vmem:[%s2923_s1 + $0xe40] sm:$0xff]  ;;  %v496_v62 = vld [vmem:[%s2923_s1 + $0xec8] sm:$0xff] }
  0xdf   :  { %1138 = vmatpush.msra.mxu2 %v446_v63  ;;  %1157 = vmatpush.msra.mxu3 %v463_v0  ;;  %v511_v63 = vld [vmem:[%s2923_s1 + $0xf40] sm:$0xff]  ;;  %v478_v0 = vld [vmem:[%s2923_s1 + $0xe38] sm:$0xff] }
  0xe0   :  { %1099 = vmatpush.msra.mxu0 %v413_v1  ;;  %1118 = vmatpush.msra.mxu1 %v430_v2  ;;  %v495_v1 = vld [vmem:[%s2923_s1 + $0xec0] sm:$0xff]  ;;  %v510_v2 = vld [vmem:[%s2923_s1 + $0xf38] sm:$0xff] }
  0xe1   :  { %1139 = vmatpush.msra.mxu2 %v445_v3  ;;  %1158 = vmatpush.msra.mxu3 %v462_v4  ;;  %v477_v3 = vld [vmem:[%s2923_s1 + $0xe30] sm:$0xff]  ;;  %v494_v4 = vld [vmem:[%s2923_s1 + $0xeb8] sm:$0xff] }
  0xe2   :  { %1100 = vmatpush.msra.mxu0 %v412_v5  ;;  %1119 = vmatpush.msra.mxu1 %v429_v6  ;;  %v509_v5 = vld [vmem:[%s2923_s1 + $0xf30] sm:$0xff]  ;;  %v476_v6 = vld [vmem:[%s2923_s1 + $0xe28] sm:$0xff] }
  0xe3   :  { %1140 = vmatpush.msra.mxu2 %v444_v7  ;;  %1159 = vmatpush.msra.mxu3 %v461_v8  ;;  %v493_v7 = vld [vmem:[%s2923_s1 + $0xeb0] sm:$0xff]  ;;  %v508_v8 = vld [vmem:[%s2923_s1 + $0xf28] sm:$0xff] }
  0xe4   :  { %1101 = vmatpush.msra.mxu0 %v411_v9  ;;  %1120 = vmatpush.msra.mxu1 %v428_v10  ;;  %v475_v9 = vld [vmem:[%s2923_s1 + $0xe20] sm:$0xff]  ;;  %v492_v10 = vld [vmem:[%s2923_s1 + $0xea8] sm:$0xff] }
  0xe5   :  { %1141 = vmatpush.msra.mxu2 %v443_v11  ;;  %1160 = vmatpush.msra.mxu3 %v460_v12  ;;  %v507_v11 = vld [vmem:[%s2923_s1 + $0xf20] sm:$0xff]  ;;  %v474_v12 = vld [vmem:[%s2923_s1 + $0xe18] sm:$0xff] }
  0xe6   :  { %1102 = vmatpush.msra.mxu0 %v410_v13  ;;  %1121 = vmatpush.msra.mxu1 %v427_v14  ;;  %v491_v13 = vld [vmem:[%s2923_s1 + $0xea0] sm:$0xff]  ;;  %v506_v14 = vld [vmem:[%s2923_s1 + $0xf18] sm:$0xff] }
  0xe7   :  { %1142 = vmatpush.msra.mxu2 %v442_v15  ;;  %1161 = vmatpush.msra.mxu3 %v459_v16  ;;  %v473_v15 = vld [vmem:[%s2923_s1 + $0xe10] sm:$0xff]  ;;  %v490_v16 = vld [vmem:[%s2923_s1 + $0xe98] sm:$0xff] }
  0xe8   :  { %1103 = vmatpush.msra.mxu0 %v409_v17  ;;  %1122 = vmatpush.msra.mxu1 %v426_v18  ;;  %v505_v17 = vld [vmem:[%s2923_s1 + $0xf10] sm:$0xff]  ;;  %v472_v18 = vld [vmem:[%s2923_s1 + $0xe08] sm:$0xff] }
  0xe9   :  { %1143 = vmatpush.msra.mxu2 %v441_v19  ;;  %1162 = vmatpush.msra.mxu3 %v458_v20  ;;  %v489_v19 = vld [vmem:[%s2923_s1 + $0xe90] sm:$0xff]  ;;  %v504_v20 = vld [vmem:[%s2923_s1 + $0xf08] sm:$0xff] }
  0xea   :  { %1104 = vmatpush.msra.mxu0 %v408_v21  ;;  %1123 = vmatpush.msra.mxu1 %v425_v22  ;;  %v471_v21 = vld [vmem:[%s2923_s1 + $0xe00] sm:$0xff]  ;;  %v488_v22 = vld [vmem:[%s2923_s1 + $0xe88] sm:$0xff] }
  0xeb   :  { %1144 = vmatpush.msra.mxu2 %v440_v24  ;;  %1163 = vmatpush.msra.mxu3 %v457_v25  ;;  %v572_v24 = vld.sshfl [vmem:[#allocation1 + $0x20] sm:$0xff pattern:$0x73625140]  ;;  %v574_v25 = vld.sshfl [vmem:[#allocation1 + $0x30] sm:$0xff pattern:$0x73625140] }
  0xec   :  { %1105 = vmatpush.msra.mxu0 %v407_v26  ;;  %1124 = vmatpush.msra.mxu1 %v424_v27  ;;  %v487_v26 = vld [vmem:[%s2923_s1 + $0xe80] sm:$0xff]  ;;  %v573_v27 = vld.sshfl [vmem:[#allocation1 + $0x28] sm:$0xff pattern:$0x73625140]  ;;  %s1326_s1 = smov [#allocation2]  }
  0xed   :  { %1145 = vmatpush.msra.mxu2 %v439_v29  ;;  %1164 = vmatpush.msra.mxu3 %v456_v30  ;;  %v1295_v29 = vld [vmem:[%s2924_s2] ss:$0 sm:$0xff]  ;;  %v627_v30 = vpop.f32.mrf.mxu0  ;;  %s1282_s2 = sshll.u32 %s1326_s1, 4  ;;  %s1283_s2 = int_to_ptr.vmem [resolvable:$true] %s1282_s2 }
  0xee   :  { %1106 = vmatmul.f32.vlgmr.msra.gmra.mxu0 %v568_v28  ;;  %1146 = vmatmul.f32.vlgmr.msra.gmra.mxu2 %v570_v32  ;;  %v628_v28 = vadd.f32 %v1295_v29, %v627_v30  ;;  %v647_v32 = vpop.f32.mrf.mxu1 }
  0xef   :  { %1170 = vmatpush.msrb.mxu0 %v486_v31  ;;  %1210 = vmatpush.msrb.mxu2 %v518_v33  ;;  %v667_v33 = vpop.f32.mrf.mxu2 }
  0xf0   :  { %1125 = vmatpush.msra.mxu1 %v423_v34  ;;  %1165 = vmatpush.msra.mxu3 %v455_v35  ;;  %v648_v31 = vadd.f32 %v647_v32, %v628_v28  ;;  %v687_v35 = vpop.f32.mrf.mxu3 }
  0xf1   :  { %1126 = vmatmul.f32.vlgmr.msra.gmra.mxu1 %v569_v36  ;;  %1166 = vmatmul.f32.vlgmr.msra.gmra.mxu3 %v571_v37 }
  0xf2   :  { %1171 = vmatpush.msrb.mxu0 %v485_v38  ;;  %1190 = vmatpush.msrb.mxu1 %v502_v39  ;;  %v668_v34 = vadd.f32 %v667_v33, %v648_v31 }
  0xf3   :  { %1211 = vmatpush.msrb.mxu2 %v517_v40  ;;  %1242 = vmatpush.msrb.mxu3 %v522_v41 }
  0xf4   :  { %1172 = vmatpush.msrb.mxu0 %v484_v42  ;;  %1191 = vmatpush.msrb.mxu1 %v501_v43  ;;  %v688_v36 = vadd.f32 %v687_v35, %v668_v34 }
  0xf5   :  { %1212 = vmatpush.msrb.mxu2 %v516_v44  ;;  %1243 = vmatpush.msrb.mxu3 %v521_v45  ;;  %v707_v37 = vpop.f32.mrf.mxu0 }
  0xf6   :  { %1173 = vmatpush.msrb.mxu0 %v483_v46  ;;  %1192 = vmatpush.msrb.mxu1 %v500_v47  ;;  %v708_v38 = vadd.f32 %v707_v37, %v688_v36  ;;  %v727_v39 = vpop.f32.mrf.mxu1 }
  0xf7   :  { %1213 = vmatpush.msrb.mxu2 %v515_v48  ;;  %1244 = vmatpush.msrb.mxu3 %v520_v49  ;;  %v747_v41 = vpop.f32.mrf.mxu2 }
  0xf8   :  { %1174 = vmatpush.msrb.mxu0 %v482_v50  ;;  %1193 = vmatpush.msrb.mxu1 %v499_v51  ;;  %v728_v40 = vadd.f32 %v727_v39, %v708_v38  ;;  %v767_v43 = vpop.f32.mrf.mxu3 }
  0xf9   :  { %1214 = vmatpush.msrb.mxu2 %v514_v52  ;;  %1245 = vmatpush.msrb.mxu3 %v519_v53 }
  0xfa   :  { %1175 = vmatpush.msrb.mxu0 %v481_v54  ;;  %1194 = vmatpush.msrb.mxu1 %v498_v55  ;;  %v748_v42 = vadd.f32 %v747_v41, %v728_v40 }
  0xfb   :  { %1215 = vmatpush.msrb.mxu2 %v513_v56  ;;  %1293 = vmatmul.msk.f32.vlgmr.msrb.gmra.mxu3 %vm607_vm0, %v575_v57 }
  0xfc   :  { %1176 = vmatpush.msrb.mxu0 %v480_v58  ;;  %1195 = vmatpush.msrb.mxu1 %v497_v59  ;;  %v768_v45 = vadd.f32 %v767_v43, %v748_v42 }
  0xfd   :  { %1216 = vmatpush.msrb.mxu2 %v512_v60  ;;  %v787_v44 = vpop.f32.mrf.mxu0 }
  0xfe   :  { %1177 = vmatpush.msrb.mxu0 %v479_v61  ;;  %1196 = vmatpush.msrb.mxu1 %v496_v62  ;;  %v788_v46 = vadd.f32 %v787_v44, %v768_v45  ;;  %v807_v47 = vpop.f32.mrf.mxu1 }
  0xff   :  { %1217 = vmatpush.msrb.mxu2 %v511_v63  ;;  %v827_v48 = vpop.f32.mrf.mxu2 }
 0x100   :  { %1178 = vmatpush.msrb.mxu0 %v478_v0  ;;  %1197 = vmatpush.msrb.mxu1 %v495_v1  ;;  %v808_v49 = vadd.f32 %v807_v47, %v788_v46  ;;  %v847_v51 = vpop.f32.mrf.mxu3 }
 0x101   :  { %1218 = vmatpush.msrb.mxu2 %v510_v2 }
 0x102   :  { %1179 = vmatpush.msrb.mxu0 %v477_v3  ;;  %1198 = vmatpush.msrb.mxu1 %v494_v4  ;;  %v828_v50 = vadd.f32 %v827_v48, %v808_v49 }
 0x103   :  { %1219 = vmatpush.msrb.mxu2 %v509_v5 }
 0x104   :  { %1180 = vmatpush.msrb.mxu0 %v476_v6  ;;  %1199 = vmatpush.msrb.mxu1 %v493_v7  ;;  %v848_v53 = vadd.f32 %v847_v51, %v828_v50 }
 0x105   :  { %1220 = vmatpush.msrb.mxu2 %v508_v8  ;;  %v867_v52 = vpop.f32.mrf.mxu0 }
 0x106   :  { %1181 = vmatpush.msrb.mxu0 %v475_v9  ;;  %1200 = vmatpush.msrb.mxu1 %v492_v10  ;;  %v868_v54 = vadd.f32 %v867_v52, %v848_v53 }
 0x107   :  { %1221 = vmatpush.msrb.mxu2 %v507_v11 }
 0x108   :  { %1182 = vmatpush.msrb.mxu0 %v474_v12  ;;  %1201 = vmatpush.msrb.mxu1 %v491_v13  ;;  %v887_v55 = vpop.f32.mrf.mxu1 }
 0x109   :  { %1222 = vmatpush.msrb.mxu2 %v506_v14  ;;  %v888_v57 = vadd.f32 %v887_v55, %v868_v54 }
 0x10a   :  { %1183 = vmatpush.msrb.mxu0 %v473_v15  ;;  %1202 = vmatpush.msrb.mxu1 %v490_v16 }
 0x10b   :  { %1223 = vmatpush.msrb.mxu2 %v505_v17  ;;  %v907_v56 = vpop.f32.mrf.mxu2 }
 0x10c   :  { %1184 = vmatpush.msrb.mxu0 %v472_v18  ;;  %1203 = vmatpush.msrb.mxu1 %v489_v19  ;;  %v908_v58 = vadd.f32 %v907_v56, %v888_v57 }
 0x10d   :  { %1224 = vmatpush.msrb.mxu2 %v504_v20 }
 0x10e   :  { %1185 = vmatpush.msrb.mxu0 %v471_v21  ;;  %1204 = vmatpush.msrb.mxu1 %v488_v22  ;;  %v927_v59 = vpop.f32.mrf.mxu3 }
 0x10f   :  { %1225 = vmatpush.msrb.mxu2 %v503_v23  ;;  %1186 = vmatmul.f32.vlgmr.msrb.gmra.mxu0 %v572_v24  ;;  %v928_v61 = vadd.f32 %v927_v59, %v908_v58 }
 0x110   :  { %1226 = vmatmul.f32.vlgmr.msrb.gmra.mxu2 %v574_v25  ;;  %1205 = vmatpush.msrb.mxu1 %v487_v26 }
 0x111   :  { %1206 = vmatmul.f32.vlgmr.msrb.gmra.mxu1 %v573_v27 }
 0x127   :  { %v947_v60 = vpop.f32.mrf.mxu0 }
 0x128   :  { %v948_v62 = vadd.f32 %v947_v60, %v928_v61 }
 0x12a   :  { %v967_v63 = vpop.f32.mrf.mxu1 }
 0x12b   :  { %v968_v1 = vadd.f32 %v967_v63, %v948_v62 }
 0x12d   :  { %v987_v0 = vpop.f32.mrf.mxu2 }
 0x12e   :  { %v988_v2 = vadd.f32 %v987_v0, %v968_v1 }
 0x130   :  { %v1007_v3 = vpop.f32.mrf.mxu3 }
 0x131   :  { %v1008_v5 = vadd.f32 %v1007_v3, %v988_v2 }
 0x149   :  { %v1027_v4 = vpop.f32.mrf.mxu0 }
 0x14a   :  { %v1028_v6 = vadd.f32 %v1027_v4, %v1008_v5 }
 0x14c   :  { %v1047_v7 = vpop.f32.mrf.mxu1 }
 0x14d   :  { %v1048_v9 = vadd.f32 %v1047_v7, %v1028_v6 }
 0x14f   :  { %v1067_v8 = vpop.f32.mrf.mxu2 }
 0x150   :  { %v1068_v10 = vadd.f32 %v1067_v8, %v1048_v9 }
 0x152   :  { %v1087_v11 = vpop.f32.mrf.mxu3 }
 0x153   :  { %v1088_v13 = vadd.f32 %v1087_v11, %v1068_v10 }
 0x16b   :  { %v1107_v12 = vpop.f32.mrf.mxu0 }
 0x16c   :  { %v1108_v14 = vadd.f32 %v1107_v12, %v1088_v13 }
 0x16e   :  { %v1127_v15 = vpop.f32.mrf.mxu1 }
 0x16f   :  { %v1128_v17 = vadd.f32 %v1127_v15, %v1108_v14 }
 0x171   :  { %v1147_v16 = vpop.f32.mrf.mxu2 }
 0x172   :  { %v1148_v18 = vadd.f32 %v1147_v16, %v1128_v17 }
 0x174   :  { %v1167_v19 = vpop.f32.mrf.mxu3 }
 0x175   :  { %v1168_v20 = vadd.f32 %v1167_v19, %v1148_v18 }
 0x17e   :  { %v1247_v26 = vpop.f32.mrf.mxu3 }
 0x18c   :  { %v1187_v21 = vpop.f32.mrf.mxu0 }
 0x18d   :  { %v1188_v22 = vadd.f32 %v1187_v21, %v1168_v20 }
 0x18e   :  { %v1207_v23 = vpop.f32.mrf.mxu1 }
 0x18f   :  { %v1208_v24 = vadd.f32 %v1207_v23, %v1188_v22 }
 0x193   :  { %v1227_v25 = vpop.f32.mrf.mxu2 }
 0x194   :  { %v1228_v27 = vadd.f32 %v1227_v25, %v1208_v24 }
 0x196   :  { %v1248_v29 = vadd.f32 %v1247_v26, %v1228_v27 }
 0x198   :  { %v1250_v30 = vmax.f32 %v1248_v29, 0.0 }
 0x19a   :  { %v1252_v28 = vsel %vm1251_vm1, %v1250_v30, -inf }
 0x19b   :  { %1253 = vmax.xlane.f32.xlu0 %v1252_v28 }
 0x20e   :  { %v1254_v32 = vpop.xlane.xlu0 %1253 }
 0x20f   :  { %v1255_v31 = vsub.f32 %v1250_v30, %v1254_v32 }
 0x211   :  { %v1256_v33 = vmul.f32 1.442695, %v1255_v31 }
 0x213   :  { %1296 = vpow2.f32 %v1256_v33 }
 0x219   :  { %v1297_v34 = vpop.eup %1296 }
 0x21a   :  { %v1258_v35 = vsel %vm1251_vm1, %v1297_v34, 0.0 }
 0x21b   :  { %1259 = vadd.xlane.f32.xlu0 %v1258_v35 }
 0x28e   :  { %v1260_v36 = vpop.xlane.xlu0 %1259 }
 0x28f   :  { %1298 = vrcp.f32 %v1260_v36  ;;  %v1272_v40 = vand.u32 2147483648, %v1260_v36  ;;  %v1270_v42 = vand.u32 2147483647, %v1260_v36  ;;  %vm1266_vm3 = vweird.f32 %v1260_v36 }
 0x291   :  { %v1273_v44 = vor.u32 1.1754944e-38, %v1272_v40  ;;  %vm1271_vm5 = vcmp.eq.f32.partialorder %v1270_v42, 8.507059e+37 }
 0x295   :  { %v1299_v37 = vpop.eup %1298 }
 0x296   :  { %v1262_v38 = vmul.f32 %v1299_v37, %v1260_v36  ;;  %vm1267_vm2 = vweird.f32 %v1299_v37 }
 0x297   :  { %vm1268_vm4 = vmor %vm1266_vm3, %vm1267_vm2 }
 0x298   :  { %v1263_v39 = vsub.f32 1.0, %v1262_v38 }
 0x29a   :  { %v1264_v41 = vmul.f32 %v1299_v37, %v1263_v39 }
 0x29c   :  { %v1265_v43 = vadd.f32 %v1299_v37, %v1264_v41 }
 0x29e   :  { %v1269_v45 = vsel %vm1268_vm4, %v1299_v37, %v1265_v43 }
 0x29f   :  { %v1274_v46 = vsel %vm1271_vm5, %v1273_v44, %v1269_v45 }
 0x2a0   :  { %v1275_v47 = vmul.f32 %v1297_v34, %v1274_v46 }
 0x2a2   :  { %1276 = vst.msk [vmem:[#allocation2] sm:$0x3] %vm1251_vm1, %v1275_v47 }
 0x2a3   :  { %1287 = dma.vmem_to_hbm [thread:$0]  %s1283_s2, 32, %s1285_s28, [#allocation3]  }
 0x2a4   :  { %1324 = dma.done.wait [#allocation3], 32  }
 0x2a5   :  { %1325 = vsyncadd [#allocation3], 4294967264 }
 0x2a6   :  { %1292 = vsyncpa [#allocation3], 1 }

</bundles_post_ra>
